<compile_context>
chip_gen: v5e
topology: v5e:2x2
jax: 0.10.0
libtpu: 0.0.40
codegen_flags: <defaults>
</compile_context>

<pallas_src>
import jax
import jax.numpy as jnp
import numpy as np
from jax.experimental import pallas as pl
from jax.experimental.pallas import tpu as pltpu

EPS = 1e-5


# ------------------------------------------------------------------- kernel --

def _make_doubleconv_kernel(H, W, Cin, Cmid, Cout, compute_dtype):
    HW = H * W

    def kernel(p1_ref, w1_ref, b1_ref, w2_ref, b2_ref, o_ref, y1p_ref):
        # ---- stage 1: single im2col contraction, K = 9*Cin -------------------
        p1 = p1_ref[0].astype(compute_dtype)                 # (HW, 9*Cin)
        w1 = w1_ref[...].astype(compute_dtype)               # (9*Cin, Cmid)
        y1 = jnp.dot(p1, w1, preferred_element_type=jnp.float32)
        y1 = jnp.maximum(y1 + b1_ref[...], 0.0)              # folded BN1 + ReLU

        # ---- stash stage-1 activation in a zero-padded VMEM scratch ----------
        y1p_ref[...] = jnp.zeros_like(y1p_ref)               # borders = 0 ('same' pad)
        y1p_ref[1:H + 1, 1:W + 1, :] = y1.reshape(H, W, Cmid)

        # ---- stage 2: 9 shifted taps, K = Cmid each, f32 accumulator ---------
        acc = jnp.zeros((HW, Cout), jnp.float32)
        for kh in range(3):
            for kw in range(3):
                tap = y1p_ref[kh:kh + H, kw:kw + W, :].reshape(HW, Cmid)
                acc += jnp.dot(tap.astype(compute_dtype),
                               w2_ref[kh * 3 + kw].astype(compute_dtype),
                               preferred_element_type=jnp.float32)
        y2 = jnp.maximum(acc + b2_ref[...], 0.0)              # folded BN2 + ReLU
        o_ref[0] = y2.astype(o_ref.dtype)                     # lane-dense (HW, Cout)

    return kernel


# --------------------------------------------------------------- BN folding --

def _fold_conv_bn(w_oihw, b, bn):
    """Fold inference-mode BN into conv weight/bias.  Returns HWIO weight."""
    scale = bn["gamma"] / jnp.sqrt(bn["var"] + EPS)           # (Cout,)
    w_hwio = jnp.transpose(w_oihw, (2, 3, 1, 0)) * scale      # (3,3,Cin,Cout)
    b_folded = scale * (b - bn["mean"]) + bn["beta"]
    return w_hwio, b_folded


# ------------------------------------------------------------- forward pass --

def double_conv(x_nchw, params, *, compute_dtype=jnp.float32):
    """DoubleConv forward.  Takes/returns NCHW to match the PyTorch module."""
    N, Cin, H, W = x_nchw.shape
    Cout = params["w1"].shape[0]
    x = jnp.transpose(x_nchw, (0, 2, 3, 1))                   # NCHW -> NHWC

    w1f, b1f = _fold_conv_bn(params["w1"], params["b1"], params["bn1"])
    w2f, b2f = _fold_conv_bn(params["w2"], params["b2"], params["bn2"])
    w1_mat = w1f.reshape(9 * Cin, Cout)                       # (9*Cin, Cout)
    w2_taps = w2f.reshape(9, Cout, Cout)                      # (9, Cmid, Cout)

    # Pad once and build the stage-1 im2col patch matrix once (tiny, XLA-side).
    xp = jnp.pad(x, ((0, 0), (1, 1), (1, 1), (0, 0)))
    p1 = jnp.concatenate([xp[:, kh:kh + H, kw:kw + W, :]
                          for kh in range(3) for kw in range(3)], axis=-1)
    p1 = p1.reshape(N, H * W, 9 * Cin)

    kernel = _make_doubleconv_kernel(H, W, Cin, Cout, Cout, compute_dtype)
    out = pl.pallas_call(
        kernel,
        out_shape=jax.ShapeDtypeStruct((N, H * W, Cout), jnp.float32),
        grid=(N,),
        in_specs=[
            pl.BlockSpec((1, H * W, 9 * Cin), lambda n: (n, 0, 0)),   # patches
            pl.BlockSpec((9 * Cin, Cout), lambda n: (0, 0)),          # w1
            pl.BlockSpec((1, Cout), lambda n: (0, 0)),                # b1
            pl.BlockSpec((9, Cout, Cout), lambda n: (0, 0, 0)),       # w2
            pl.BlockSpec((1, Cout), lambda n: (0, 0)),                # b2
        ],
        out_specs=pl.BlockSpec((1, H * W, Cout), lambda n: (n, 0, 0)),
        scratch_shapes=[pltpu.VMEM((H + 2, W + 2, Cout), jnp.float32)],
        compiler_params=pltpu.CompilerParams(
            dimension_semantics=("parallel",)),
    )(p1, w1_mat, b1f[None, :], w2_taps, b2f[None, :])

    out = out.reshape(N, H, W, Cout)
    return jnp.transpose(out, (0, 3, 1, 2))                   # NHWC -> NCHW


# --------------------------------------------------------- parameter set-up --

def _init_params(key, in_ch, out_ch):
    def bn_params(k, c):
        k1, k2, k3, k4 = jax.random.split(k, 4)
        return dict(
            gamma=1.0 + 0.1 * jax.random.normal(k1, (c,), jnp.float32),
            beta=0.1 * jax.random.normal(k2, (c,), jnp.float32),
            mean=0.1 * jax.random.normal(k3, (c,), jnp.float32),
            var=1.0 + 0.5 * jax.random.uniform(k4, (c,), jnp.float32),
        )

    ks = jax.random.split(key, 6)
    return dict(
        w1=0.2 * jax.random.normal(ks[0], (out_ch, in_ch, 3, 3), jnp.float32),
        b1=0.1 * jax.random.normal(ks[1], (out_ch,), jnp.float32),
        bn1=bn_params(ks[2], out_ch),
        w2=0.1 * jax.random.normal(ks[3], (out_ch, out_ch, 3, 3), jnp.float32),
        b2=0.1 * jax.random.normal(ks[4], (out_ch,), jnp.float32),
        bn2=bn_params(ks[5], out_ch),
    )


# --------------------------------------------------------- pure-JAX reference

def _ref_conv_bn_relu(x_nhwc, w_oihw, b, bn):
    y = jax.lax.conv_general_dilated(
        x_nhwc, jnp.transpose(w_oihw, (2, 3, 1, 0)),
        window_strides=(1, 1), padding=[(1, 1), (1, 1)],
        dimension_numbers=("NHWC", "HWIO", "NHWC"),
        precision=jax.lax.Precision.HIGHEST)
    y = y + b
    y = bn["gamma"] * (y - bn["mean"]) / jnp.sqrt(bn["var"] + EPS) + bn["beta"]
    return jnp.maximum(y, 0.0)


def _ref_forward(x_nchw, params):
    x = jnp.transpose(x_nchw, (0, 2, 3, 1))
    y = _ref_conv_bn_relu(x, params["w1"], params["b1"], params["bn1"])
    y = _ref_conv_bn_relu(y, params["w2"], params["b2"], params["bn2"])
    return jnp.transpose(y, (0, 3, 1, 2))


# --------------------------------------------------------------------- main --

if __name__ == "__main__":
    key = jax.random.PRNGKey(0)
    kx, kp = jax.random.split(key)

    in_ch, out_ch = 4, 32
    N, H, W = 2, 16, 16
    x = jax.random.normal(kx, (N, in_ch, H, W), jnp.float32)
    params = _init_params(kp, in_ch, out_ch)

    out = jax.block_until_ready(double_conv(x, params))
    assert out.shape == (N, out_ch, H, W), out.shape

    ref = _ref_forward(x, params)
    # Tolerance covers TPU default-precision (bf16-pass) matmul differences
    # between the fused kernel and the XLA reference convolution.
    np.testing.assert_allclose(np.asarray(out), np.asarray(ref),
                               rtol=1e-2, atol=2e-2)

    print("KERNEL_OK")
</pallas_src>

<mosaic_0001>
module attributes {stable_mosaic.version = 11 : i64} {
  func.func @kernel(%arg0: i32, %arg1: memref<1x256x36xf32, #tpu.memory_space<vmem>>, %arg2: memref<36x32xf32, #tpu.memory_space<vmem>>, %arg3: memref<1x32xf32, #tpu.memory_space<vmem>>, %arg4: memref<9x32x32xf32, #tpu.memory_space<vmem>>, %arg5: memref<1x32xf32, #tpu.memory_space<vmem>>, %arg6: memref<1x256x32xf32, #tpu.memory_space<vmem>>, %arg7: memref<18x18x32xf32, #tpu.memory_space<vmem>>) attributes {dimension_semantics = [#tpu.dimension_semantics<parallel>], iteration_bounds = array<i64: 2>, scalar_prefetch = 0 : i64, scratch_operands = 1 : i64, tpu.core_type = #tpu.core_type<tc>, window_params = [{transform_indices = @transform_0, window_bounds = array<i64: 1, 256, 36>}, {pipeline_mode = #tpu.pipeline_mode<synchronous>, transform_indices = @transform_1, window_bounds = array<i64: 36, 32>}, {pipeline_mode = #tpu.pipeline_mode<synchronous>, transform_indices = @transform_2, window_bounds = array<i64: 1, 32>}, {pipeline_mode = #tpu.pipeline_mode<synchronous>, transform_indices = @transform_3, window_bounds = array<i64: 9, 32, 32>}, {pipeline_mode = #tpu.pipeline_mode<synchronous>, transform_indices = @transform_4, window_bounds = array<i64: 1, 32>}, {transform_indices = @transform_5, window_bounds = array<i64: 1, 256, 32>}]} {
    %c0 = arith.constant 0 : index
    %c0_0 = arith.constant 0 : index
    %c0_1 = arith.constant 0 : index
    %0 = vector.load %arg1[%c0, %c0_0, %c0_1] : memref<1x256x36xf32, #tpu.memory_space<vmem>>, vector<1x256x36xf32>
    %1 = vector.shape_cast %0 : vector<1x256x36xf32> to vector<256x36xf32>
    %c0_2 = arith.constant 0 : index
    %c0_3 = arith.constant 0 : index
    %2 = vector.load %arg2[%c0_2, %c0_3] : memref<36x32xf32, #tpu.memory_space<vmem>>, vector<36x32xf32>
    %cst = arith.constant dense<0.000000e+00> : vector<256x32xf32>
    %3 = tpu.matmul %1, %2, %cst {dimension_numbers = #tpu.dot_dimension_numbers<[1], [0], [0], [1], [0, 0, 1, 1], [], []>} : vector<256x36xf32>, vector<36x32xf32>, vector<256x32xf32> -> vector<256x32xf32>
    %c0_4 = arith.constant 0 : index
    %c0_5 = arith.constant 0 : index
    %4 = vector.load %arg3[%c0_4, %c0_5] : memref<1x32xf32, #tpu.memory_space<vmem>>, vector<1x32xf32>
    %5 = vector.broadcast %4 : vector<1x32xf32> to vector<256x32xf32>
    %6 = arith.addf %3, %5 : vector<256x32xf32>
    %cst_6 = arith.constant 0.000000e+00 : f32
    %7 = vector.broadcast %cst_6 : f32 to vector<256x32xf32>
    %8 = arith.maximumf %6, %7 : vector<256x32xf32>
    %cst_7 = arith.constant 0.000000e+00 : f32
    %9 = vector.broadcast %cst_7 : f32 to vector<18x18x32xf32>
    %c0_8 = arith.constant 0 : index
    %c0_9 = arith.constant 0 : index
    %c0_10 = arith.constant 0 : index
    %10 = vector.load %arg7[%c0_8, %c0_9, %c0_10] : memref<18x18x32xf32, #tpu.memory_space<vmem>>, vector<18x18x32xf32>
    tpu.vector_store %arg7[%c0_8, %c0_9, %c0_10], %9 {strides = array<i32>} : memref<18x18x32xf32, #tpu.memory_space<vmem>>, vector<18x18x32xf32>,
    %11 = vector.shape_cast %8 : vector<256x32xf32> to vector<16x16x32xf32>
    %c1 = arith.constant 1 : index
    %c1_11 = arith.constant 1 : index
    %c0_12 = arith.constant 0 : index
    %12 = vector.load %arg7[%c1, %c1_11, %c0_12] : memref<18x18x32xf32, #tpu.memory_space<vmem>>, vector<16x16x32xf32>
    tpu.vector_store %arg7[%c1, %c1_11, %c0_12], %11 {strides = array<i32>} : memref<18x18x32xf32, #tpu.memory_space<vmem>>, vector<16x16x32xf32>,
    %cst_13 = arith.constant 0.000000e+00 : f32
    %13 = vector.broadcast %cst_13 : f32 to vector<256x32xf32>
    %c0_14 = arith.constant 0 : index
    %c0_15 = arith.constant 0 : index
    %c0_16 = arith.constant 0 : index
    %14 = vector.load %arg7[%c0_14, %c0_15, %c0_16] : memref<18x18x32xf32, #tpu.memory_space<vmem>>, vector<16x16x32xf32>
    %15 = vector.shape_cast %14 : vector<16x16x32xf32> to vector<256x32xf32>
    %c0_17 = arith.constant 0 : index
    %c0_18 = arith.constant 0 : index
    %c0_19 = arith.constant 0 : index
    %16 = vector.load %arg4[%c0_17, %c0_18, %c0_19] : memref<9x32x32xf32, #tpu.memory_space<vmem>>, vector<1x32x32xf32>
    %17 = vector.shape_cast %16 : vector<1x32x32xf32> to vector<32x32xf32>
    %cst_20 = arith.constant dense<0.000000e+00> : vector<256x32xf32>
    %18 = tpu.matmul %15, %17, %cst_20 {dimension_numbers = #tpu.dot_dimension_numbers<[1], [0], [0], [1], [0, 0, 1, 1], [], []>} : vector<256x32xf32>, vector<32x32xf32>, vector<256x32xf32> -> vector<256x32xf32>
    %19 = arith.addf %13, %18 : vector<256x32xf32>
    %c0_21 = arith.constant 0 : index
    %c1_22 = arith.constant 1 : index
    %c0_23 = arith.constant 0 : index
    %20 = vector.load %arg7[%c0_21, %c1_22, %c0_23] : memref<18x18x32xf32, #tpu.memory_space<vmem>>, vector<16x16x32xf32>
    %21 = vector.shape_cast %20 : vector<16x16x32xf32> to vector<256x32xf32>
    %c1_24 = arith.constant 1 : index
    %c0_25 = arith.constant 0 : index
    %c0_26 = arith.constant 0 : index
    %22 = vector.load %arg4[%c1_24, %c0_25, %c0_26] : memref<9x32x32xf32, #tpu.memory_space<vmem>>, vector<1x32x32xf32>
    %23 = vector.shape_cast %22 : vector<1x32x32xf32> to vector<32x32xf32>
    %cst_27 = arith.constant dense<0.000000e+00> : vector<256x32xf32>
    %24 = tpu.matmul %21, %23, %cst_27 {dimension_numbers = #tpu.dot_dimension_numbers<[1], [0], [0], [1], [0, 0, 1, 1], [], []>} : vector<256x32xf32>, vector<32x32xf32>, vector<256x32xf32> -> vector<256x32xf32>
    %25 = arith.addf %19, %24 : vector<256x32xf32>
    %c0_28 = arith.constant 0 : index
    %c2 = arith.constant 2 : index
    %c0_29 = arith.constant 0 : index
    %26 = vector.load %arg7[%c0_28, %c2, %c0_29] : memref<18x18x32xf32, #tpu.memory_space<vmem>>, vector<16x16x32xf32>
    %27 = vector.shape_cast %26 : vector<16x16x32xf32> to vector<256x32xf32>
    %c2_30 = arith.constant 2 : index
    %c0_31 = arith.constant 0 : index
    %c0_32 = arith.constant 0 : index
    %28 = vector.load %arg4[%c2_30, %c0_31, %c0_32] : memref<9x32x32xf32, #tpu.memory_space<vmem>>, vector<1x32x32xf32>
    %29 = vector.shape_cast %28 : vector<1x32x32xf32> to vector<32x32xf32>
    %cst_33 = arith.constant dense<0.000000e+00> : vector<256x32xf32>
    %30 = tpu.matmul %27, %29, %cst_33 {dimension_numbers = #tpu.dot_dimension_numbers<[1], [0], [0], [1], [0, 0, 1, 1], [], []>} : vector<256x32xf32>, vector<32x32xf32>, vector<256x32xf32> -> vector<256x32xf32>
    %31 = arith.addf %25, %30 : vector<256x32xf32>
    %c1_34 = arith.constant 1 : index
    %c0_35 = arith.constant 0 : index
    %c0_36 = arith.constant 0 : index
    %32 = vector.load %arg7[%c1_34, %c0_35, %c0_36] : memref<18x18x32xf32, #tpu.memory_space<vmem>>, vector<16x16x32xf32>
    %33 = vector.shape_cast %32 : vector<16x16x32xf32> to vector<256x32xf32>
    %c3 = arith.constant 3 : index
    %c0_37 = arith.constant 0 : index
    %c0_38 = arith.constant 0 : index
    %34 = vector.load %arg4[%c3, %c0_37, %c0_38] : memref<9x32x32xf32, #tpu.memory_space<vmem>>, vector<1x32x32xf32>
    %35 = vector.shape_cast %34 : vector<1x32x32xf32> to vector<32x32xf32>
    %cst_39 = arith.constant dense<0.000000e+00> : vector<256x32xf32>
    %36 = tpu.matmul %33, %35, %cst_39 {dimension_numbers = #tpu.dot_dimension_numbers<[1], [0], [0], [1], [0, 0, 1, 1], [], []>} : vector<256x32xf32>, vector<32x32xf32>, vector<256x32xf32> -> vector<256x32xf32>
    %37 = arith.addf %31, %36 : vector<256x32xf32>
    %c1_40 = arith.constant 1 : index
    %c1_41 = arith.constant 1 : index
    %c0_42 = arith.constant 0 : index
    %38 = vector.load %arg7[%c1_40, %c1_41, %c0_42] : memref<18x18x32xf32, #tpu.memory_space<vmem>>, vector<16x16x32xf32>
    %39 = vector.shape_cast %38 : vector<16x16x32xf32> to vector<256x32xf32>
    %c4 = arith.constant 4 : index
    %c0_43 = arith.constant 0 : index
    %c0_44 = arith.constant 0 : index
    %40 = vector.load %arg4[%c4, %c0_43, %c0_44] : memref<9x32x32xf32, #tpu.memory_space<vmem>>, vector<1x32x32xf32>
    %41 = vector.shape_cast %40 : vector<1x32x32xf32> to vector<32x32xf32>
    %cst_45 = arith.constant dense<0.000000e+00> : vector<256x32xf32>
    %42 = tpu.matmul %39, %41, %cst_45 {dimension_numbers = #tpu.dot_dimension_numbers<[1], [0], [0], [1], [0, 0, 1, 1], [], []>} : vector<256x32xf32>, vector<32x32xf32>, vector<256x32xf32> -> vector<256x32xf32>
    %43 = arith.addf %37, %42 : vector<256x32xf32>
    %c1_46 = arith.constant 1 : index
    %c2_47 = arith.constant 2 : index
    %c0_48 = arith.constant 0 : index
    %44 = vector.load %arg7[%c1_46, %c2_47, %c0_48] : memref<18x18x32xf32, #tpu.memory_space<vmem>>, vector<16x16x32xf32>
    %45 = vector.shape_cast %44 : vector<16x16x32xf32> to vector<256x32xf32>
    %c5 = arith.constant 5 : index
    %c0_49 = arith.constant 0 : index
    %c0_50 = arith.constant 0 : index
    %46 = vector.load %arg4[%c5, %c0_49, %c0_50] : memref<9x32x32xf32, #tpu.memory_space<vmem>>, vector<1x32x32xf32>
    %47 = vector.shape_cast %46 : vector<1x32x32xf32> to vector<32x32xf32>
    %cst_51 = arith.constant dense<0.000000e+00> : vector<256x32xf32>
    %48 = tpu.matmul %45, %47, %cst_51 {dimension_numbers = #tpu.dot_dimension_numbers<[1], [0], [0], [1], [0, 0, 1, 1], [], []>} : vector<256x32xf32>, vector<32x32xf32>, vector<256x32xf32> -> vector<256x32xf32>
    %49 = arith.addf %43, %48 : vector<256x32xf32>
    %c2_52 = arith.constant 2 : index
    %c0_53 = arith.constant 0 : index
    %c0_54 = arith.constant 0 : index
    %50 = vector.load %arg7[%c2_52, %c0_53, %c0_54] : memref<18x18x32xf32, #tpu.memory_space<vmem>>, vector<16x16x32xf32>
    %51 = vector.shape_cast %50 : vector<16x16x32xf32> to vector<256x32xf32>
    %c6 = arith.constant 6 : index
    %c0_55 = arith.constant 0 : index
    %c0_56 = arith.constant 0 : index
    %52 = vector.load %arg4[%c6, %c0_55, %c0_56] : memref<9x32x32xf32, #tpu.memory_space<vmem>>, vector<1x32x32xf32>
    %53 = vector.shape_cast %52 : vector<1x32x32xf32> to vector<32x32xf32>
    %cst_57 = arith.constant dense<0.000000e+00> : vector<256x32xf32>
    %54 = tpu.matmul %51, %53, %cst_57 {dimension_numbers = #tpu.dot_dimension_numbers<[1], [0], [0], [1], [0, 0, 1, 1], [], []>} : vector<256x32xf32>, vector<32x32xf32>, vector<256x32xf32> -> vector<256x32xf32>
    %55 = arith.addf %49, %54 : vector<256x32xf32>
    %c2_58 = arith.constant 2 : index
    %c1_59 = arith.constant 1 : index
    %c0_60 = arith.constant 0 : index
    %56 = vector.load %arg7[%c2_58, %c1_59, %c0_60] : memref<18x18x32xf32, #tpu.memory_space<vmem>>, vector<16x16x32xf32>
    %57 = vector.shape_cast %56 : vector<16x16x32xf32> to vector<256x32xf32>
    %c7 = arith.constant 7 : index
    %c0_61 = arith.constant 0 : index
    %c0_62 = arith.constant 0 : index
    %58 = vector.load %arg4[%c7, %c0_61, %c0_62] : memref<9x32x32xf32, #tpu.memory_space<vmem>>, vector<1x32x32xf32>
    %59 = vector.shape_cast %58 : vector<1x32x32xf32> to vector<32x32xf32>
    %cst_63 = arith.constant dense<0.000000e+00> : vector<256x32xf32>
    %60 = tpu.matmul %57, %59, %cst_63 {dimension_numbers = #tpu.dot_dimension_numbers<[1], [0], [0], [1], [0, 0, 1, 1], [], []>} : vector<256x32xf32>, vector<32x32xf32>, vector<256x32xf32> -> vector<256x32xf32>
    %61 = arith.addf %55, %60 : vector<256x32xf32>
    %c2_64 = arith.constant 2 : index
    %c2_65 = arith.constant 2 : index
    %c0_66 = arith.constant 0 : index
    %62 = vector.load %arg7[%c2_64, %c2_65, %c0_66] : memref<18x18x32xf32, #tpu.memory_space<vmem>>, vector<16x16x32xf32>
    %63 = vector.shape_cast %62 : vector<16x16x32xf32> to vector<256x32xf32>
    %c8 = arith.constant 8 : index
    %c0_67 = arith.constant 0 : index
    %c0_68 = arith.constant 0 : index
    %64 = vector.load %arg4[%c8, %c0_67, %c0_68] : memref<9x32x32xf32, #tpu.memory_space<vmem>>, vector<1x32x32xf32>
    %65 = vector.shape_cast %64 : vector<1x32x32xf32> to vector<32x32xf32>
    %cst_69 = arith.constant dense<0.000000e+00> : vector<256x32xf32>
    %66 = tpu.matmul %63, %65, %cst_69 {dimension_numbers = #tpu.dot_dimension_numbers<[1], [0], [0], [1], [0, 0, 1, 1], [], []>} : vector<256x32xf32>, vector<32x32xf32>, vector<256x32xf32> -> vector<256x32xf32>
    %67 = arith.addf %61, %66 : vector<256x32xf32>
    %c0_70 = arith.constant 0 : index
    %c0_71 = arith.constant 0 : index
    %68 = vector.load %arg5[%c0_70, %c0_71] : memref<1x32xf32, #tpu.memory_space<vmem>>, vector<1x32xf32>
    %69 = vector.broadcast %68 : vector<1x32xf32> to vector<256x32xf32>
    %70 = arith.addf %67, %69 : vector<256x32xf32>
    %cst_72 = arith.constant 0.000000e+00 : f32
    %71 = vector.broadcast %cst_72 : f32 to vector<256x32xf32>
    %72 = arith.maximumf %70, %71 : vector<256x32xf32>
    %c0_73 = arith.constant 0 : index
    %c0_74 = arith.constant 0 : index
    %c0_75 = arith.constant 0 : index
    %73 = vector.load %arg6[%c0_73, %c0_74, %c0_75] : memref<1x256x32xf32, #tpu.memory_space<vmem>>, vector<1x256x32xf32>
    %74 = vector.shape_cast %73 : vector<1x256x32xf32> to vector<256x32xf32>
    %75 = vector.shape_cast %72 : vector<256x32xf32> to vector<1x256x32xf32>
    tpu.vector_store %arg6[%c0_73, %c0_74, %c0_75], %75 {strides = array<i32>} : memref<1x256x32xf32, #tpu.memory_space<vmem>>, vector<1x256x32xf32>,
    return
  }
  func.func @transform_0(%arg0: i32) -> (i32, i32, i32) {
    %c0_i32 = arith.constant 0 : i32
    %c0_i32_0 = arith.constant 0 : i32
    %c0_i32_1 = arith.constant 0 : i32
    return %arg0, %c0_i32, %c0_i32_0 : i32, i32, i32
  }
  func.func @transform_1(%arg0: i32) -> (i32, i32) {
    %c0_i32 = arith.constant 0 : i32
    %c0_i32_0 = arith.constant 0 : i32
    %c0_i32_1 = arith.constant 0 : i32
    return %c0_i32, %c0_i32_0 : i32, i32
  }
  func.func @transform_2(%arg0: i32) -> (i32, i32) {
    %c0_i32 = arith.constant 0 : i32
    %c0_i32_0 = arith.constant 0 : i32
    %c0_i32_1 = arith.constant 0 : i32
    return %c0_i32, %c0_i32_0 : i32, i32
  }
  func.func @transform_3(%arg0: i32) -> (i32, i32, i32) {
    %c0_i32 = arith.constant 0 : i32
    %c0_i32_0 = arith.constant 0 : i32
    %c0_i32_1 = arith.constant 0 : i32
    %c0_i32_2 = arith.constant 0 : i32
    return %c0_i32, %c0_i32_0, %c0_i32_1 : i32, i32, i32
  }
  func.func @transform_4(%arg0: i32) -> (i32, i32) {
    %c0_i32 = arith.constant 0 : i32
    %c0_i32_0 = arith.constant 0 : i32
    %c0_i32_1 = arith.constant 0 : i32
    return %c0_i32, %c0_i32_0 : i32, i32
  }
  func.func @transform_5(%arg0: i32) -> (i32, i32, i32) {
    %c0_i32 = arith.constant 0 : i32
    %c0_i32_0 = arith.constant 0 : i32
    %c0_i32_1 = arith.constant 0 : i32
    return %arg0, %c0_i32, %c0_i32_0 : i32, i32, i32
  }
}

</mosaic_0001>

<bundles_post_ra>
// kernel: tpu_custom_call.1
= control target key start
LH: loop header
LB: loop body
LE: loop exit
PB: predicated region body
PF: predicated region fallthrough
CT: control target
= control target key end

     0   :  { %s3618_s18 = smov 0   ;;  %s5249_s0 = inlined_call_operand.vmem [shape: f32[2,256,36], index: 0, kind: input, shape index: {}]   ;;  %s5250_s1 = inlined_call_operand.vmem [shape: f32[36,32], index: 1, kind: input, shape index: {}]   ;;  %s5251_s2 = inlined_call_operand.vmem [shape: f32[1,32], index: 2, kind: input, shape index: {}]   ;;  %s5252_s3 = inlined_call_operand.vmem [shape: f32[9,32,32], index: 3, kind: input, shape index: {}]   ;;  %s5253_s4 = inlined_call_operand.vmem [shape: f32[1,32], index: 4, kind: input, shape index: {}]   ;;  %s5254_s5 = inlined_call_operand.vmem [shape: f32[2,256,32], index: 5, kind: output, shape index: {}]  }
   0x1 LB: > { %s3194_s19 = sadd.s32 4294967295, %s3585_s18   ;;  %p3198_p0 = scmp.ge.s32.totalorder %s3585_s18, 1  ;;  %s3585_s18 = sphi %s3618_s18, %s15_s18  }
   0x2   : > { %p187_p1 = scmp.lt.s32.totalorder %s3585_s18, 3 }
   0x4   : > { %p188_p2 = pnand %p3198_p0, %p187_p1 }
   0x6   : > { %191 = sbr.rel (%p188_p2) target bundleno = 1049 (0x419), region = 40 }
   0xb   : > { %v261_v0 = vld [vmem:[%s5250_s1 + $0x20] sm:$0xf]  ;;  %vm363_vm0 = vcmask 1043456   ;;  %v260_v1 = vld [vmem:[%s5250_s1 + $0x18] sm:$0xff]  ;;  %p215_p3 = scmp.lt.s32.totalorder %s3194_s19, 1  ;;  %v259_v2 = vld [vmem:[%s5250_s1 + $0x10] sm:$0xff] }
   0xc   : > { %3203 = vmatpush.msk.msra.mxu0 %vm363_vm0, %v261_v0  ;;  %v258_v3 = vld [vmem:[%s5250_s1 + $0x8] sm:$0xff]  ;;  %v257_v4 = vld [vmem:[%s5250_s1] sm:$0xff]  ;;  %vm266_vm1 = vcmask 293888   ;;  %v3239_v16 = vld [vmem:[%s5252_s3 + $0x38] sm:$0xff]  ;;  %vm512_vm2 = vcmask 261120   ;;  %v3587_v19 = vmov 0.0  }
   0xd   : > { %s5396_s19 = smov (!%p215_p3, %s3194_s19), 1  ;;  %v3238_v17 = vld [vmem:[%s5252_s3 + $0x30] sm:$0xff]  ;;  %782 = vmatpush.msra.mxu1 %v3239_v16  ;;  %3560 = vmatpush.msra.mxu3 %v3239_v16  ;;  %v3237_v18 = vld [vmem:[%s5252_s3 + $0x28] sm:$0xff]  ;;  %513 = vst.msk [vmem:[#allocation2] sm:$0xff] %vm512_vm2, %v3587_v19  ;;  %v3236_v21 = vld [vmem:[%s5252_s3 + $0x20] sm:$0xff]  ;;  %vm515_vm3 = vcmask 254976  }
   0xe   : > { %379 = vmatpush.msra.mxu0 %v260_v1  ;;  %s3558_s28 = sshll.u32 %s5396_s19, 8  ;;  %514 = vst.msk [vmem:[#allocation2 + $0x8] sm:$0xff] %vm512_vm2, %v3587_v19  ;;  %v3779_v27 = vld [vmem:[%s5251_s2] ss:$0 sm:$0xff] }
   0xf   : > { %s3646_s6 = scalar_lea.vmem %s5249_s0, %s3558_s28  ;;  %783 = vmatpush.msra.mxu1 %v3238_v17  ;;  %3561 = vmatpush.msra.mxu3 %v3238_v17  ;;  %517 = vst.msk [vmem:[#allocation2 + $0x18] sm:$0xff] %vm512_vm2, %v3587_v19  ;;  %s5005_s23 = scalar_lea.vmem %s5254_s5, %s3558_s28 }
  0x10   : > { %380 = vmatpush.msra.mxu0 %v259_v2  ;;  %v225_v5 = vld [vmem:[%s3646_s6] sm:$0xff]  ;;  %v226_v6 = vld [vmem:[%s3646_s6 + $0x8] sm:$0xff]  ;;  %v227_v7 = vld [vmem:[%s3646_s6 + $0x10] sm:$0xff]  ;;  %518 = vst.msk [vmem:[#allocation2 + $0x20] sm:$0xff] %vm512_vm2, %v3587_v19 }
  0x11   : > { %v228_v8 = vld [vmem:[%s3646_s6 + $0x18] sm:$0xff]  ;;  %v229_v9 = vld [vmem:[%s3646_s6 + $0x20] sm:$0xff]  ;;  %v230_v10 = vld [vmem:[%s3646_s6 + $0x28] sm:$0xff]  ;;  %784 = vmatpush.msra.mxu1 %v3237_v18  ;;  %3562 = vmatpush.msra.mxu3 %v3237_v18  ;;  %520 = vst.msk [vmem:[#allocation2 + $0x30] sm:$0xff] %vm512_vm2, %v3587_v19 }
  0x12   : > { %381 = vmatpush.msra.mxu0 %v258_v3  ;;  %v231_v11 = vld [vmem:[%s3646_s6 + $0x30] sm:$0xff]  ;;  %v232_v12 = vld [vmem:[%s3646_s6 + $0x38] sm:$0xff]  ;;  %v233_v13 = vld [vmem:[%s3646_s6 + $0x40] sm:$0xff]  ;;  %521 = vst.msk [vmem:[#allocation2 + $0x38] sm:$0xff] %vm512_vm2, %v3587_v19 }
  0x13   : > { %v234_v14 = vld [vmem:[%s3646_s6 + $0x48] sm:$0xff]  ;;  %v235_v15 = vld [vmem:[%s3646_s6 + $0x50] sm:$0xff]  ;;  %v236_v20 = vld [vmem:[%s3646_s6 + $0x58] sm:$0xff]  ;;  %523 = vst.msk [vmem:[#allocation2 + $0x48] sm:$0xff] %vm512_vm2, %v3587_v19  ;;  %785 = vmatpush.msra.mxu1 %v3236_v21  ;;  %3563 = vmatpush.msra.mxu3 %v3236_v21 }
  0x14   : > { %382 = vmatpush.msra.mxu0 %v257_v4  ;;  %524 = vst.msk [vmem:[#allocation2 + $0x50] sm:$0xff] %vm512_vm2, %v3587_v19  ;;  %v237_v23 = vld [vmem:[%s3646_s6 + $0x60] sm:$0xff]  ;;  %v238_v24 = vld [vmem:[%s3646_s6 + $0x68] sm:$0xff]  ;;  %v239_v25 = vld [vmem:[%s3646_s6 + $0x70] sm:$0xff] }
  0x15   : > { %3204 = vmatmul.msk.f32.vlgmr.msra.gmra.mxu0 %vm266_vm1, %v225_v5  ;;  %v637_v22 = vld [vmem:[#allocation2 + $0x1] sm:$0xff]  ;;  %526 = vst.msk [vmem:[#allocation2 + $0x60] sm:$0xff] %vm512_vm2, %v3587_v19  ;;  %v240_v26 = vld [vmem:[%s3646_s6 + $0x78] sm:$0xff]  ;;  %v243_v39 = vld [vmem:[%s3646_s6 + $0x90] sm:$0xff] }
  0x16   : > { %3240 = vmatmul.msk.f32.vlgmr.msra.gmra.mxu1 %vm512_vm2, %v637_v22  ;;  %527 = vst.msk [vmem:[#allocation2 + $0x68] sm:$0xff] %vm512_vm2, %v3587_v19  ;;  %v241_v29 = vld [vmem:[%s3646_s6 + $0x80] sm:$0xff]  ;;  %v242_v34 = vld [vmem:[%s3646_s6 + $0x88] sm:$0xff]  ;;  %v244_v44 = vld [vmem:[%s3646_s6 + $0x98] sm:$0xff] }
  0x17   : > { %529 = vst.msk [vmem:[#allocation2 + $0x78] sm:$0xff] %vm512_vm2, %v3587_v19  ;;  %v245_v49 = vld [vmem:[%s3646_s6 + $0xa0] sm:$0xff]  ;;  %v246_v54 = vld [vmem:[%s3646_s6 + $0xa8] sm:$0xff]  ;;  %v247_v59 = vld [vmem:[%s3646_s6 + $0xb0] sm:$0xff] }
  0x18   : > { %530 = vst.msk [vmem:[#allocation2 + $0x80] sm:$0xff] %vm512_vm2, %v3587_v19  ;;  %v248_v0 = vld [vmem:[%s3646_s6 + $0xb8] sm:$0xff]  ;;  %v249_v5 = vld [vmem:[%s3646_s6 + $0xc0] sm:$0xff]  ;;  %v635_v21 = vld [vmem:[%s5252_s3 + $0x10] sm:$0xff] }
  0x19   : > { %532 = vst.msk [vmem:[#allocation2 + $0x90] sm:$0xff] %vm512_vm2, %v3587_v19  ;;  %v3342_v22 = vld [vmem:[%s5252_s3 + $0x70] sm:$0xff] }
  0x1a   : > { %533 = vst.msk [vmem:[#allocation2 + $0x98] sm:$0xff] %vm512_vm2, %v3587_v19 }
  0x1b   : > { %535 = vst.msk [vmem:[#allocation2 + $0xa8] sm:$0xff] %vm512_vm2, %v3587_v19 }
  0x1c   : > { %536 = vst.msk [vmem:[#allocation2 + $0xb0] sm:$0xff] %vm512_vm2, %v3587_v19 }
  0x1d   : > { %3205 = vmatmul.msk.f32.gmra.mxu0 %vm266_vm1, %v226_v6  ;;  %538 = vst.msk [vmem:[#allocation2 + $0xc0] sm:$0xff] %vm512_vm2, %v3587_v19 }
  0x1e   : > { %539 = vst.msk [vmem:[#allocation2 + $0xc8] sm:$0xff] %vm512_vm2, %v3587_v19 }
  0x1f   : > { %541 = vst.msk [vmem:[#allocation2 + $0xd8] sm:$0xff] %vm512_vm2, %v3587_v19 }
  0x20   : > { %542 = vst.msk [vmem:[#allocation2 + $0xe0] sm:$0xff] %vm512_vm2, %v3587_v19 }
  0x21   : > { %544 = vst.msk [vmem:[#allocation2 + $0xf0] sm:$0xff] %vm512_vm2, %v3587_v19 }
  0x22   : > { %545 = vst.msk [vmem:[#allocation2 + $0xf8] sm:$0xff] %vm512_vm2, %v3587_v19 }
  0x23   : > { %547 = vst.msk [vmem:[#allocation2 + $0x108] sm:$0xff] %vm512_vm2, %v3587_v19 }
  0x24   : > { %548 = vst.msk [vmem:[#allocation2 + $0x110] sm:$0xff] %vm512_vm2, %v3587_v19 }
  0x25   : > { %3206 = vmatmul.msk.f32.gmra.mxu0 %vm266_vm1, %v227_v7  ;;  %550 = vst.msk [vmem:[#allocation2 + $0x120] sm:$0xff] %vm512_vm2, %v3587_v19 }
  0x26   : > { %551 = vst.msk [vmem:[#allocation2 + $0x128] sm:$0xff] %vm512_vm2, %v3587_v19 }
  0x27   : > { %553 = vst.msk [vmem:[#allocation2 + $0x138] sm:$0xff] %vm512_vm2, %v3587_v19 }
  0x28   : > { %554 = vst.msk [vmem:[#allocation2 + $0x140] sm:$0xff] %vm512_vm2, %v3587_v19 }
  0x29   : > { %556 = vst.msk [vmem:[#allocation2 + $0x150] sm:$0xff] %vm512_vm2, %v3587_v19 }
  0x2a   : > { %557 = vst.msk [vmem:[#allocation2 + $0x158] sm:$0xff] %vm512_vm2, %v3587_v19 }
  0x2b   : > { %559 = vst.msk [vmem:[#allocation2 + $0x168] sm:$0xff] %vm512_vm2, %v3587_v19 }
  0x2c   : > { %560 = vst.msk [vmem:[#allocation2 + $0x170] sm:$0xff] %vm512_vm2, %v3587_v19 }
  0x2d   : > { %3207 = vmatmul.msk.f32.gmra.mxu0 %vm266_vm1, %v228_v8  ;;  %562 = vst.msk [vmem:[#allocation2 + $0x180] sm:$0xff] %vm512_vm2, %v3587_v19 }
  0x2e   : > { %563 = vst.msk [vmem:[#allocation2 + $0x188] sm:$0xff] %vm512_vm2, %v3587_v19 }
  0x2f   : > { %565 = vst.msk [vmem:[#allocation2 + $0x198] sm:$0xff] %vm512_vm2, %v3587_v19 }
  0x30   : > { %566 = vst.msk [vmem:[#allocation2 + $0x1a0] sm:$0xff] %vm512_vm2, %v3587_v19 }
  0x31   : > { %516 = vst.msk [vmem:[#allocation2 + $0x10] sm:$0x3] %vm515_vm3, %v3587_v19 }
  0x32   : > { %519 = vst.msk [vmem:[#allocation2 + $0x28] sm:$0x3] %vm515_vm3, %v3587_v19 }
  0x33   : > { %522 = vst.msk [vmem:[#allocation2 + $0x40] sm:$0x3] %vm515_vm3, %v3587_v19 }
  0x34   : > { %525 = vst.msk [vmem:[#allocation2 + $0x58] sm:$0x3] %vm515_vm3, %v3587_v19 }
  0x35   : > { %3208 = vmatmul.msk.f32.gmra.mxu0 %vm266_vm1, %v229_v9  ;;  %528 = vst.msk [vmem:[#allocation2 + $0x70] sm:$0x3] %vm515_vm3, %v3587_v19 }
  0x36   : > { %531 = vst.msk [vmem:[#allocation2 + $0x88] sm:$0x3] %vm515_vm3, %v3587_v19 }
  0x37   : > { %534 = vst.msk [vmem:[#allocation2 + $0xa0] sm:$0x3] %vm515_vm3, %v3587_v19 }
  0x38   : > { %v638_v30 = vld [vmem:[#allocation2 + $0x9] sm:$0xff]  ;;  %537 = vst.msk [vmem:[#allocation2 + $0xb8] sm:$0x3] %vm515_vm3, %v3587_v19 }
  0x39   : > { %3241 = vmatmul.msk.f32.gmra.mxu1 %vm512_vm2, %v638_v30  ;;  %540 = vst.msk [vmem:[#allocation2 + $0xd0] sm:$0x3] %vm515_vm3, %v3587_v19  ;;  %v633_v30 = vld [vmem:[%s5252_s3] sm:$0xff] }
  0x3a   : > { %543 = vst.msk [vmem:[#allocation2 + $0xe8] sm:$0x3] %vm515_vm3, %v3587_v19 }
  0x3b   : > { %546 = vst.msk [vmem:[#allocation2 + $0x100] sm:$0x3] %vm515_vm3, %v3587_v19 }
  0x3c   : > { %549 = vst.msk [vmem:[#allocation2 + $0x118] sm:$0x3] %vm515_vm3, %v3587_v19 }
  0x3d   : > { %3209 = vmatmul.msk.f32.gmra.mxu0 %vm266_vm1, %v230_v10  ;;  %552 = vst.msk [vmem:[#allocation2 + $0x130] sm:$0x3] %vm515_vm3, %v3587_v19  ;;  %v250_v10 = vld [vmem:[%s3646_s6 + $0xc8] sm:$0xff] }
  0x3e   : > { %555 = vst.msk [vmem:[#allocation2 + $0x148] sm:$0x3] %vm515_vm3, %v3587_v19 }
  0x3f   : > { %558 = vst.msk [vmem:[#allocation2 + $0x160] sm:$0x3] %vm515_vm3, %v3587_v19 }
  0x40   : > { %561 = vst.msk [vmem:[#allocation2 + $0x178] sm:$0x3] %vm515_vm3, %v3587_v19 }
  0x41   : > { %564 = vst.msk [vmem:[#allocation2 + $0x190] sm:$0x3] %vm515_vm3, %v3587_v19 }
  0x42   : > { %567 = vst.msk [vmem:[#allocation2 + $0x1a8] sm:$0x3] %vm515_vm3, %v3587_v19  ;;  %v636_v19 = vld [vmem:[%s5252_s3 + $0x18] sm:$0xff] }
  0x43   : > { %3564 = vmatpush.msra.mxu2 %v636_v19  ;;  %991 = vmatpush.msrb.mxu0 %v636_v19 }
  0x45   : > { %3210 = vmatmul.msk.f32.gmra.mxu0 %vm266_vm1, %v231_v11  ;;  %3565 = vmatpush.msra.mxu2 %v635_v21 }
  0x46   : > { %992 = vmatpush.msrb.mxu0 %v635_v21 }
  0x4d   : > { %3211 = vmatmul.msk.f32.gmra.mxu0 %vm266_vm1, %v232_v12 }
  0x55   : > { %3212 = vmatmul.msk.f32.gmra.mxu0 %vm266_vm1, %v233_v13 }
  0x5d   : > { %3213 = vmatmul.msk.f32.gmra.mxu0 %vm266_vm1, %v234_v14 }
  0x65   : > { %3214 = vmatmul.msk.f32.gmra.mxu0 %vm266_vm1, %v235_v15  ;;  %v251_v15 = vld [vmem:[%s3646_s6 + $0xd0] sm:$0xff] }
  0x6d   : > { %3215 = vmatmul.msk.f32.gmra.mxu0 %vm266_vm1, %v236_v20  ;;  %v3343_v20 = vld [vmem:[%s5252_s3 + $0x78] sm:$0xff] }
  0x6e   : > { %1515 = vmatpush.msrb.mxu1 %v3343_v20 }
  0x70   : > { %1516 = vmatpush.msrb.mxu1 %v3342_v22 }
  0x75   : > { %3216 = vmatmul.msk.f32.gmra.mxu0 %vm266_vm1, %v237_v23 }
  0x7d   : > { %3217 = vmatmul.msk.f32.gmra.mxu0 %vm266_vm1, %v238_v24  ;;  %v252_v24 = vld [vmem:[%s3646_s6 + $0xd8] sm:$0xff] }
  0x85   : > { %3218 = vmatmul.msk.f32.gmra.mxu0 %vm266_vm1, %v239_v25 }
  0x8d   : > { %3219 = vmatmul.msk.f32.gmra.mxu0 %vm266_vm1, %v240_v26  ;;  %v634_v26 = vld [vmem:[%s5252_s3 + $0x8] sm:$0xff] }
  0x8e   : > { %3566 = vmatpush.msra.mxu2 %v634_v26  ;;  %993 = vmatpush.msrb.mxu0 %v634_v26 }
  0x90   : > { %3567 = vmatpush.msra.mxu2 %v633_v30  ;;  %994 = vmatpush.msrb.mxu0 %v633_v30 }
  0x92   : > { %v384_v28 = vpop.f32.mrf.mxu0 }
  0x93   : > { %v385_v31 = vadd.f32 %v3779_v27, %v384_v28  ;;  %v3341_v28 = vld [vmem:[%s5252_s3 + $0x68] sm:$0xff] }
  0x94   : > { %1517 = vmatpush.msrb.mxu1 %v3341_v28 }
  0x95   : > { %v480_v32 = vmax.f32 %v385_v31, 0.0  ;;  %3220 = vmatmul.msk.f32.gmra.mxu0 %vm266_vm1, %v241_v29  ;;  %v3340_v31 = vld [vmem:[%s5252_s3 + $0x60] sm:$0xff] }
  0x96   : > { %1518 = vmatpush.msrb.mxu1 %v3340_v31 }
  0x97   : > { %569 = vst.msk [vmem:[#allocation2 + $0x19] sm:$0xff] %vm512_vm2, %v480_v32 }
  0x9a   : > { %v387_v33 = vpop.f32.mrf.mxu0 }
  0x9b   : > { %v388_v35 = vadd.f32 %v3779_v27, %v387_v33  ;;  %v3307_v33 = vld [vmem:[%s5252_s3 + $0x58] sm:$0xff] }
  0x9c   : > { %1237 = vmatpush.msrb.mxu3 %v3307_v33 }
  0x9d   : > { %v481_v36 = vmax.f32 %v388_v35, 0.0  ;;  %3221 = vmatmul.msk.f32.gmra.mxu0 %vm266_vm1, %v242_v34  ;;  %v253_v35 = vld [vmem:[%s3646_s6 + $0xe0] sm:$0xff] }
  0x9e   : > { %v3817_v37 = vld [vmem:[#allocation2 + $0x19] sm:$0xff] }
  0x9f   : > { %570 = vst.msk [vmem:[#allocation2 + $0x21] sm:$0xff] %vm512_vm2, %v481_v36  ;;  %3242 = vmatmul.msk.f32.gmra.mxu1 %vm512_vm2, %v3817_v37 }
  0xa2   : > { %v390_v38 = vpop.f32.mrf.mxu0 }
  0xa3   : > { %v391_v40 = vadd.f32 %v3779_v27, %v390_v38 }
  0xa5   : > { %v482_v41 = vmax.f32 %v391_v40, 0.0  ;;  %3222 = vmatmul.msk.f32.gmra.mxu0 %vm266_vm1, %v243_v39  ;;  %v3379_v40 = vld [vmem:[%s5252_s3 + $0x98] sm:$0xff] }
  0xa6   : > { %v3825_v42 = vld [vmem:[#allocation2 + $0x21] sm:$0xff]  ;;  %1793 = vmatpush.msrb.mxu2 %v3379_v40 }
  0xa7   : > { %571 = vst.msk [vmem:[#allocation2 + $0x31] sm:$0xff] %vm512_vm2, %v482_v41  ;;  %3243 = vmatmul.msk.f32.gmra.mxu1 %vm512_vm2, %v3825_v42  ;;  %v3305_v40 = vld [vmem:[%s5252_s3 + $0x48] sm:$0xff] }
  0xaa   : > { %v393_v43 = vpop.f32.mrf.mxu0 }
  0xab   : > { %v394_v45 = vadd.f32 %v3779_v27, %v393_v43  ;;  %v254_v43 = vld [vmem:[%s3646_s6 + $0xe8] sm:$0xff] }
  0xad   : > { %v483_v46 = vmax.f32 %v394_v45, 0.0  ;;  %3223 = vmatmul.msk.f32.gmra.mxu0 %vm266_vm1, %v244_v44 }
  0xae   : > { %v3833_v47 = vld [vmem:[#allocation2 + $0x31] sm:$0xff] }
  0xaf   : > { %572 = vst.msk [vmem:[#allocation2 + $0x39] sm:$0xff] %vm512_vm2, %v483_v46  ;;  %3244 = vmatmul.msk.f32.gmra.mxu1 %vm512_vm2, %v3833_v47  ;;  %v4004_v21 = vld [vmem:[#allocation2 + $0x30] sm:$0xff] }
  0xb2   : > { %v396_v48 = vpop.f32.mrf.mxu0 }
  0xb3   : > { %v397_v50 = vadd.f32 %v3779_v27, %v396_v48 }
  0xb5   : > { %v484_v51 = vmax.f32 %v397_v50, 0.0  ;;  %3224 = vmatmul.msk.f32.gmra.mxu0 %vm266_vm1, %v245_v49  ;;  %v255_v49 = vld [vmem:[%s3646_s6 + $0xf0] sm:$0xff] }
  0xb6   : > { %v3841_v52 = vld [vmem:[#allocation2 + $0x39] sm:$0xff] }
  0xb7   : > { %573 = vst.msk [vmem:[#allocation2 + $0x49] sm:$0xff] %vm512_vm2, %v484_v51  ;;  %3245 = vmatmul.msk.f32.gmra.mxu1 %vm512_vm2, %v3841_v52 }
  0xba   : > { %v399_v53 = vpop.f32.mrf.mxu0 }
  0xbb   : > { %v400_v55 = vadd.f32 %v3779_v27, %v399_v53 }
  0xbd   : > { %v485_v56 = vmax.f32 %v400_v55, 0.0  ;;  %3225 = vmatmul.msk.f32.gmra.mxu0 %vm266_vm1, %v246_v54  ;;  %v3956_v54 = vpop.f32.mrf.mxu1 }
  0xbe   : > { %v3849_v57 = vld [vmem:[#allocation2 + $0x49] sm:$0xff] }
  0xbf   : > { %574 = vst.msk [vmem:[#allocation2 + $0x51] sm:$0xff] %vm512_vm2, %v485_v56  ;;  %3246 = vmatmul.msk.f32.gmra.mxu1 %vm512_vm2, %v3849_v57  ;;  %v256_v56 = vld [vmem:[%s3646_s6 + $0xf8] sm:$0xff] }
  0xc2   : > { %v402_v58 = vpop.f32.mrf.mxu0 }
  0xc3   : > { %v403_v60 = vadd.f32 %v3779_v27, %v402_v58 }
  0xc5   : > { %v486_v61 = vmax.f32 %v403_v60, 0.0  ;;  %3226 = vmatmul.msk.f32.gmra.mxu0 %vm266_vm1, %v247_v59 }
  0xc6   : > { %v3857_v62 = vld [vmem:[#allocation2 + $0x51] sm:$0xff] }
  0xc7   : > { %575 = vst.msk [vmem:[#allocation2 + $0x61] sm:$0xff] %vm512_vm2, %v486_v61  ;;  %3247 = vmatmul.msk.f32.gmra.mxu1 %vm512_vm2, %v3857_v62 }
  0xca   : > { %v405_v63 = vpop.f32.mrf.mxu0 }
  0xcb   : > { %v406_v1 = vadd.f32 %v3779_v27, %v405_v63  ;;  %v1370_v63 = vld [vmem:[#allocation2 + $0x18] sm:$0xff] }
  0xcd   : > { %v487_v2 = vmax.f32 %v406_v1, 0.0  ;;  %3227 = vmatmul.msk.f32.gmra.mxu0 %vm266_vm1, %v248_v0  ;;  %v3306_v0 = vld [vmem:[%s5252_s3 + $0x50] sm:$0xff] }
  0xce   : > { %v3865_v3 = vld [vmem:[#allocation2 + $0x61] sm:$0xff]  ;;  %1238 = vmatpush.msrb.mxu3 %v3306_v0 }
  0xcf   : > { %576 = vst.msk [vmem:[#allocation2 + $0x69] sm:$0xff] %vm512_vm2, %v487_v2  ;;  %3248 = vmatmul.msk.f32.gmra.mxu1 %vm512_vm2, %v3865_v3  ;;  %v3974_v2 = vpop.f32.mrf.mxu1 }
  0xd0   : > { %1239 = vmatpush.msrb.mxu3 %v3305_v40 }
  0xd2   : > { %v408_v4 = vpop.f32.mrf.mxu0 }
  0xd3   : > { %v409_v6 = vadd.f32 %v3779_v27, %v408_v4  ;;  %v601_v4 = vld [vmem:[#allocation2] sm:$0xff] }
  0xd5   : > { %v488_v7 = vmax.f32 %v409_v6, 0.0  ;;  %3228 = vmatmul.msk.f32.gmra.mxu0 %vm266_vm1, %v249_v5 }
  0xd6   : > { %v3873_v8 = vld [vmem:[#allocation2 + $0x69] sm:$0xff] }
  0xd7   : > { %577 = vst.msk [vmem:[#allocation2 + $0x79] sm:$0xff] %vm512_vm2, %v488_v7  ;;  %3249 = vmatmul.msk.f32.gmra.mxu1 %vm512_vm2, %v3873_v8 }
  0xda   : > { %v411_v9 = vpop.f32.mrf.mxu0 }
  0xdb   : > { %v412_v11 = vadd.f32 %v3779_v27, %v411_v9 }
  0xdd   : > { %v489_v12 = vmax.f32 %v412_v11, 0.0  ;;  %3229 = vmatmul.msk.f32.gmra.mxu0 %vm266_vm1, %v250_v10  ;;  %v1371_v10 = vld [vmem:[#allocation2 + $0x20] sm:$0xff]  ;;  %v3378_v11 = vld [vmem:[%s5252_s3 + $0x90] sm:$0xff] }
  0xde   : > { %v3881_v13 = vld [vmem:[#allocation2 + $0x79] sm:$0xff]  ;;  %1794 = vmatpush.msrb.mxu2 %v3378_v11 }
  0xdf   : > { %578 = vst.msk [vmem:[#allocation2 + $0x81] sm:$0xff] %vm512_vm2, %v489_v12  ;;  %3250 = vmatmul.msk.f32.gmra.mxu1 %vm512_vm2, %v3881_v13 }
  0xe2   : > { %v414_v14 = vpop.f32.mrf.mxu0 }
  0xe3   : > { %v415_v16 = vadd.f32 %v3779_v27, %v414_v14  ;;  %v602_v14 = vld [vmem:[#allocation2 + $0x8] sm:$0xff] }
  0xe5   : > { %v490_v17 = vmax.f32 %v415_v16, 0.0  ;;  %3230 = vmatmul.msk.f32.gmra.mxu0 %vm266_vm1, %v251_v15 }
  0xe6   : > { %v3889_v18 = vld [vmem:[#allocation2 + $0x81] sm:$0xff] }
  0xe7   : > { %579 = vst.msk [vmem:[#allocation2 + $0x91] sm:$0xff] %vm512_vm2, %v490_v17  ;;  %3251 = vmatmul.msk.f32.gmra.mxu1 %vm512_vm2, %v3889_v18 }
  0xea   : > { %v417_v23 = vpop.f32.mrf.mxu0 }
  0xeb   : > { %v418_v25 = vadd.f32 %v3779_v27, %v417_v23 }
  0xed   : > { %v491_v29 = vmax.f32 %v418_v25, 0.0  ;;  %3231 = vmatmul.msk.f32.gmra.mxu0 %vm266_vm1, %v252_v24 }
  0xee   : > { %v3921_v32 = vld [vmem:[#allocation2 + $0x91] sm:$0xff] }
  0xef   : > { %580 = vst.msk [vmem:[#allocation2 + $0x99] sm:$0xff] %vm512_vm2, %v491_v29  ;;  %3252 = vmatmul.msk.f32.gmra.mxu1 %vm512_vm2, %v3921_v32  ;;  %v4021_v29 = vld [vmem:[#allocation2 + $0x38] sm:$0xff] }
  0xf2   : > { %v420_v34 = vpop.f32.mrf.mxu0 }
  0xf3   : > { %v421_v36 = vadd.f32 %v3779_v27, %v420_v34 }
  0xf5   : > { %v492_v38 = vmax.f32 %v421_v36, 0.0  ;;  %3232 = vmatmul.msk.f32.gmra.mxu0 %vm266_vm1, %v253_v35 }
  0xf6   : > { %v3932_v39 = vld [vmem:[#allocation2 + $0x99] sm:$0xff] }
  0xf7   : > { %581 = vst.msk [vmem:[#allocation2 + $0xa9] sm:$0xff] %vm512_vm2, %v492_v38  ;;  %3253 = vmatmul.msk.f32.gmra.mxu1 %vm512_vm2, %v3932_v39  ;;  %v4038_v38 = vld [vmem:[#allocation2 + $0x48] sm:$0xff] }
  0xfa   : > { %v423_v41 = vpop.f32.mrf.mxu0 }
  0xfb   : > { %v424_v44 = vadd.f32 %v3779_v27, %v423_v41 }
  0xfd   : > { %v493_v45 = vmax.f32 %v424_v44, 0.0  ;;  %3233 = vmatmul.msk.f32.gmra.mxu0 %vm266_vm1, %v254_v43 }
  0xfe   : > { %v3943_v46 = vld [vmem:[#allocation2 + $0xa9] sm:$0xff] }
  0xff   : > { %582 = vst.msk [vmem:[#allocation2 + $0xb1] sm:$0xff] %vm512_vm2, %v493_v45  ;;  %3254 = vmatmul.msk.f32.gmra.mxu1 %vm512_vm2, %v3943_v46 }
 0x102   : > { %v426_v48 = vpop.f32.mrf.mxu0 }
 0x103   : > { %v427_v50 = vadd.f32 %v3779_v27, %v426_v48 }
 0x105   : > { %v494_v51 = vmax.f32 %v427_v50, 0.0  ;;  %3234 = vmatmul.msk.f32.gmra.mxu0 %vm266_vm1, %v255_v49  ;;  %v4059_v50 = vld [vmem:[#allocation2 + $0x50] sm:$0xff] }
 0x106   : > { %v3951_v53 = vld [vmem:[#allocation2 + $0xb1] sm:$0xff] }
 0x107   : > { %583 = vst.msk [vmem:[#allocation2 + $0xc1] sm:$0xff] %vm512_vm2, %v494_v51  ;;  %3255 = vmatmul.msk.f32.gmra.mxu1 %vm512_vm2, %v3951_v53  ;;  %v3377_v51 = vld [vmem:[%s5252_s3 + $0x88] sm:$0xff] }
 0x108   : > { %1795 = vmatpush.msrb.mxu2 %v3377_v51 }
 0x10a   : > { %v429_v55 = vpop.f32.mrf.mxu0 }
 0x10b   : > { %v430_v58 = vadd.f32 %v3779_v27, %v429_v55 }
 0x10d   : > { %v495_v59 = vmax.f32 %v430_v58, 0.0  ;;  %3235 = vmatmul.msk.f32.gmra.mxu0 %vm266_vm1, %v256_v56 }
 0x10e   : > { %v3961_v60 = vld [vmem:[#allocation2 + $0xc1] sm:$0xff] }
 0x10f   : > { %v3963_v61 = vld [vmem:[#allocation2 + $0xc0] sm:$0xff]  ;;  %584 = vst.msk [vmem:[#allocation2 + $0xc9] sm:$0xff] %vm512_vm2, %v495_v59  ;;  %3256 = vmatmul.msk.f32.vlgmr.msra.gmra.mxu3 %vm512_vm2, %v3961_v60  ;;  %3344 = vmatmul.msk.f32.vlgmr.msrb.gmra.mxu1 %vm512_vm2, %v1370_v63 }
 0x110   : > { %3288 = vmatmul.msk.f32.vlgmr.msra.gmra.mxu2 %vm512_vm2, %v3963_v61 }
 0x112   : > { %v432_v1 = vpop.f32.mrf.mxu0 }
 0x113   : > { %v433_v5 = vadd.f32 %v3779_v27, %v432_v1  ;;  %v4080_v1 = vld [vmem:[#allocation2 + $0x60] sm:$0xff] }
 0x115   : > { %v496_v6 = vmax.f32 %v433_v5, 0.0  ;;  %3272 = vmatmul.msk.f32.vlgmr.msrb.gmra.mxu0 %vm512_vm2, %v601_v4 }
 0x116   : > { %v3978_v7 = vld [vmem:[#allocation2 + $0xc9] sm:$0xff] }
 0x117   : > { %v3980_v9 = vld [vmem:[#allocation2 + $0xc8] sm:$0xff]  ;;  %585 = vst.msk [vmem:[#allocation2 + $0xd9] sm:$0xff] %vm512_vm2, %v496_v6  ;;  %3257 = vmatmul.msk.f32.gmra.mxu3 %vm512_vm2, %v3978_v7  ;;  %3345 = vmatmul.msk.f32.gmra.mxu1 %vm512_vm2, %v1371_v10 }
 0x118   : > { %3289 = vmatmul.msk.f32.gmra.mxu2 %vm512_vm2, %v3980_v9 }
 0x11a   : > { %v435_v12 = vpop.f32.mrf.mxu0 }
 0x11b   : > { %v436_v15 = vadd.f32 %v3779_v27, %v435_v12 }
 0x11c   : > { %v3992_v16 = vpop.f32.mrf.mxu1 }
 0x11d   : > { %v497_v17 = vmax.f32 %v436_v15, 0.0  ;;  %3273 = vmatmul.msk.f32.gmra.mxu0 %vm512_vm2, %v602_v14  ;;  %v4098_v14 = vld [vmem:[#allocation2 + $0x68] sm:$0xff] }
 0x11e   : > { %v3995_v19 = vld [vmem:[#allocation2 + $0xd9] sm:$0xff] }
 0x11f   : > { %v3997_v20 = vld [vmem:[#allocation2 + $0xd8] sm:$0xff]  ;;  %586 = vst.msk [vmem:[#allocation2 + $0xe1] sm:$0xff] %vm512_vm2, %v497_v17  ;;  %3258 = vmatmul.msk.f32.gmra.mxu3 %vm512_vm2, %v3995_v19  ;;  %3346 = vmatmul.msk.f32.gmra.mxu1 %vm512_vm2, %v4004_v21 }
 0x120   : > { %3290 = vmatmul.msk.f32.gmra.mxu2 %vm512_vm2, %v3997_v20 }
 0x122   : > { %v438_v22 = vpop.f32.mrf.mxu0 }
 0x123   : > { %v439_v23 = vadd.f32 %v3779_v27, %v438_v22 }
 0x124   : > { %v4009_v24 = vpop.f32.mrf.mxu1 }
 0x125   : > { %v498_v25 = vmax.f32 %v439_v23, 0.0  ;;  %3274 = vmatmul.msk.f32.gmra.mxu0 %vm512_vm2, %v1370_v63 }
 0x126   : > { %v4012_v26 = vld [vmem:[#allocation2 + $0xe1] sm:$0xff] }
 0x127   : > { %v4014_v28 = vld [vmem:[#allocation2 + $0xe0] sm:$0xff]  ;;  %587 = vst.msk [vmem:[#allocation2 + $0xf1] sm:$0xff] %vm512_vm2, %v498_v25  ;;  %3259 = vmatmul.msk.f32.gmra.mxu3 %vm512_vm2, %v4012_v26  ;;  %3347 = vmatmul.msk.f32.gmra.mxu1 %vm512_vm2, %v4021_v29 }
 0x128   : > { %3291 = vmatmul.msk.f32.gmra.mxu2 %vm512_vm2, %v4014_v28 }
 0x12a   : > { %v441_v30 = vpop.f32.mrf.mxu0 }
 0x12b   : > { %v442_v31 = vadd.f32 %v3779_v27, %v441_v30 }
 0x12c   : > { %v4026_v33 = vpop.f32.mrf.mxu1 }
 0x12d   : > { %v499_v34 = vmax.f32 %v442_v31, 0.0  ;;  %3275 = vmatmul.msk.f32.gmra.mxu0 %vm512_vm2, %v1371_v10  ;;  %v4116_v31 = vld [vmem:[#allocation2 + $0x78] sm:$0xff] }
 0x12e   : > { %v4029_v35 = vld [vmem:[#allocation2 + $0xf1] sm:$0xff] }
 0x12f   : > { %v4031_v36 = vld [vmem:[#allocation2 + $0xf0] sm:$0xff]  ;;  %588 = vst.msk [vmem:[#allocation2 + $0xf9] sm:$0xff] %vm512_vm2, %v499_v34  ;;  %3260 = vmatmul.msk.f32.gmra.mxu3 %vm512_vm2, %v4029_v35  ;;  %3348 = vmatmul.msk.f32.gmra.mxu1 %vm512_vm2, %v4038_v38  ;;  %v3304_v34 = vld [vmem:[%s5252_s3 + $0x40] sm:$0xff] }
 0x130   : > { %3292 = vmatmul.msk.f32.gmra.mxu2 %vm512_vm2, %v4031_v36  ;;  %1240 = vmatpush.msrb.mxu3 %v3304_v34  ;;  %v4158_v34 = vld [vmem:[#allocation2 + $0x90] sm:$0xff] }
 0x132   : > { %v444_v41 = vpop.f32.mrf.mxu0 }
 0x133   : > { %v445_v43 = vadd.f32 %v3779_v27, %v444_v41 }
 0x134   : > { %v4046_v44 = vpop.f32.mrf.mxu1 }
 0x135   : > { %v500_v45 = vmax.f32 %v445_v43, 0.0  ;;  %3276 = vmatmul.msk.f32.gmra.mxu0 %vm512_vm2, %v4004_v21 }
 0x136   : > { %v4050_v48 = vld [vmem:[#allocation2 + $0xf9] sm:$0xff] }
 0x137   : > { %v4052_v49 = vld [vmem:[#allocation2 + $0xf8] sm:$0xff]  ;;  %589 = vst.msk [vmem:[#allocation2 + $0x109] sm:$0xff] %vm512_vm2, %v500_v45  ;;  %3261 = vmatmul.msk.f32.gmra.mxu3 %vm512_vm2, %v4050_v48  ;;  %3349 = vmatmul.msk.f32.gmra.mxu1 %vm512_vm2, %v4059_v50 }
 0x138   : > { %3293 = vmatmul.msk.f32.gmra.mxu2 %vm512_vm2, %v4052_v49 }
 0x13a   : > { %v447_v55 = vpop.f32.mrf.mxu0 }
 0x13b   : > { %v448_v56 = vadd.f32 %v3779_v27, %v447_v55 }
 0x13c   : > { %v4067_v58 = vpop.f32.mrf.mxu1 }
 0x13d   : > { %5287 = vst [vmem:[#allocation3_spill] sm:$0xff] %v4067_v58  ;;  %v501_v59 = vmax.f32 %v448_v56, 0.0  ;;  %3277 = vmatmul.msk.f32.gmra.mxu0 %vm512_vm2, %v4021_v29  ;;  %v4137_v56 = vld [vmem:[#allocation2 + $0x80] sm:$0xff] }
 0x13e   : > { %v4071_v63 = vld [vmem:[#allocation2 + $0x109] sm:$0xff] }
 0x13f   : > { %v4073_v0 = vld [vmem:[#allocation2 + $0x108] sm:$0xff]  ;;  %590 = vst.msk [vmem:[#allocation2 + $0x111] sm:$0xff] %vm512_vm2, %v501_v59  ;;  %3262 = vmatmul.msk.f32.gmra.mxu3 %vm512_vm2, %v4071_v63  ;;  %3350 = vmatmul.msk.f32.gmra.mxu1 %vm512_vm2, %v4080_v1  ;;  %v3376_v59 = vld [vmem:[%s5252_s3 + $0x80] sm:$0xff] }
 0x140   : > { %3294 = vmatmul.msk.f32.gmra.mxu2 %vm512_vm2, %v4073_v0 }
 0x141   : > { %1796 = vmatpush.msrb.mxu2 %v3376_v59 }
 0x142   : > { %v450_v4 = vpop.f32.mrf.mxu0 }
 0x143   : > { %v451_v5 = vadd.f32 %v3779_v27, %v450_v4 }
 0x144   : > { %v4085_v6 = vpop.f32.mrf.mxu1 }
 0x145   : > { %5288 = vst [vmem:[#allocation4_spill] sm:$0xff] %v4085_v6  ;;  %v502_v10 = vmax.f32 %v451_v5, 0.0  ;;  %3278 = vmatmul.msk.f32.gmra.mxu0 %vm512_vm2, %v4038_v38 }
 0x146   : > { %v4089_v11 = vld [vmem:[#allocation2 + $0x111] sm:$0xff] }
 0x147   : > { %v4091_v12 = vld [vmem:[#allocation2 + $0x110] sm:$0xff]  ;;  %591 = vst.msk [vmem:[#allocation2 + $0x121] sm:$0xff] %vm512_vm2, %v502_v10  ;;  %3263 = vmatmul.msk.f32.gmra.mxu3 %vm512_vm2, %v4089_v11  ;;  %3351 = vmatmul.msk.f32.gmra.mxu1 %vm512_vm2, %v4098_v14 }
 0x148   : > { %3295 = vmatmul.msk.f32.gmra.mxu2 %vm512_vm2, %v4091_v12 }
 0x14a   : > { %v453_v15 = vpop.f32.mrf.mxu0 }
 0x14b   : > { %v454_v17 = vadd.f32 %v3779_v27, %v453_v15 }
 0x14c   : > { %v4103_v22 = vpop.f32.mrf.mxu1 }
 0x14d   : > { %5289 = vst [vmem:[#allocation5_spill] sm:$0xff] %v4103_v22  ;;  %v503_v23 = vmax.f32 %v454_v17, 0.0  ;;  %3279 = vmatmul.msk.f32.gmra.mxu0 %vm512_vm2, %v4059_v50 }
 0x14e   : > { %v4107_v25 = vld [vmem:[#allocation2 + $0x121] sm:$0xff] }
 0x14f   : > { %5290 = vst [vmem:[#allocation6_spill] sm:$0xff] %v4107_v25  ;;  %v4109_v30 = vld [vmem:[#allocation2 + $0x120] sm:$0xff]  ;;  %3264 = vmatmul.msk.f32.gmra.mxu3 %vm512_vm2, %v4107_v25  ;;  %3352 = vmatmul.msk.f32.gmra.mxu1 %vm512_vm2, %v4116_v31 }
 0x150   : > { %592 = vst.msk [vmem:[#allocation2 + $0x129] sm:$0xff] %vm512_vm2, %v503_v23  ;;  %3296 = vmatmul.msk.f32.gmra.mxu2 %vm512_vm2, %v4109_v30 }
 0x152   : > { %v456_v40 = vpop.f32.mrf.mxu0 }
 0x153   : > { %v457_v41 = vadd.f32 %v3779_v27, %v456_v40 }
 0x154   : > { %v4124_v43 = vpop.f32.mrf.mxu1 }
 0x155   : > { %5291 = vst [vmem:[#allocation7_spill] sm:$0xff] %v4124_v43  ;;  %v504_v45 = vmax.f32 %v457_v41, 0.0  ;;  %3280 = vmatmul.msk.f32.gmra.mxu0 %vm512_vm2, %v4080_v1 }
 0x157   : > { %v4128_v51 = vld [vmem:[#allocation2 + $0x129] sm:$0xff]  ;;  %593 = vst.msk [vmem:[#allocation2 + $0x139] sm:$0xff] %vm512_vm2, %v504_v45  ;;  %3353 = vmatmul.msk.f32.gmra.mxu1 %vm512_vm2, %v4137_v56 }
 0x158   : > { %5292 = vst [vmem:[#allocation8_spill] sm:$0xff] %v4128_v51  ;;  %v4130_v55 = vld [vmem:[#allocation2 + $0x128] sm:$0xff]  ;;  %3265 = vmatmul.msk.f32.gmra.mxu3 %vm512_vm2, %v4128_v51 }
 0x159   : > { %3297 = vmatmul.msk.f32.gmra.mxu2 %vm512_vm2, %v4130_v55 }
 0x15a   : > { %v459_v4 = vpop.f32.mrf.mxu0 }
 0x15b   : > { %v460_v5 = vadd.f32 %v3779_v27, %v459_v4 }
 0x15c   : > { %v4145_v10 = vpop.f32.mrf.mxu1 }
 0x15d   : > { %5293 = vst [vmem:[#allocation9_spill] sm:$0xff] %v4145_v10  ;;  %v505_v15 = vmax.f32 %v460_v5, 0.0  ;;  %3281 = vmatmul.msk.f32.gmra.mxu0 %vm512_vm2, %v4098_v14 }
 0x15e   : > { %v4149_v17 = vld [vmem:[#allocation2 + $0x139] sm:$0xff] }
 0x15f   : > { %5294 = vst [vmem:[#allocation10_spill] sm:$0xff] %v4149_v17  ;;  %v4151_v23 = vld [vmem:[#allocation2 + $0x138] sm:$0xff]  ;;  %3354 = vmatmul.msk.f32.gmra.mxu1 %vm512_vm2, %v4158_v34 }
 0x160   : > { %594 = vst.msk [vmem:[#allocation2 + $0x141] sm:$0xff] %vm512_vm2, %v505_v15  ;;  %3266 = vmatmul.msk.f32.gmra.mxu3 %vm512_vm2, %v4149_v17  ;;  %v4176_v15 = vld [vmem:[#allocation2 + $0x98] sm:$0xff] }
 0x161   : > { %3298 = vmatmul.msk.f32.gmra.mxu2 %vm512_vm2, %v4151_v23 }
 0x162   : > { %v462_v40 = vpop.f32.mrf.mxu0 }
 0x163   : > { %v463_v41 = vadd.f32 %v3779_v27, %v462_v40 }
 0x164   : > { %v4163_v45 = vpop.f32.mrf.mxu1 }
 0x165   : > { %5295 = vst [vmem:[#allocation11_spill] sm:$0xff] %v4163_v45  ;;  %v506_v59 = vmax.f32 %v463_v41, 0.0  ;;  %3282 = vmatmul.msk.f32.gmra.mxu0 %vm512_vm2, %v4116_v31 }
 0x167   : > { %v4167_v4 = vld [vmem:[#allocation2 + $0x141] sm:$0xff]  ;;  %595 = vst.msk [vmem:[#allocation2 + $0x151] sm:$0xff] %vm512_vm2, %v506_v59  ;;  %3355 = vmatmul.msk.f32.gmra.mxu1 %vm512_vm2, %v4176_v15 }
 0x168   : > { %5296 = vst [vmem:[#allocation12_spill] sm:$0xff] %v4167_v4  ;;  %v4169_v5 = vld [vmem:[#allocation2 + $0x140] sm:$0xff]  ;;  %3267 = vmatmul.msk.f32.gmra.mxu3 %vm512_vm2, %v4167_v4  ;;  %v3451_v4 = vld [vmem:[%s5252_s3 + $0xd8] sm:$0xff] }
 0x169   : > { %3299 = vmatmul.msk.f32.gmra.mxu2 %vm512_vm2, %v4169_v5  ;;  %2350 = vmatpush.msra.mxu0 %v3451_v4  ;;  %v3448_v4 = vld [vmem:[%s5252_s3 + $0xc0] sm:$0xff] }
 0x16a   : > { %v465_v40 = vpop.f32.mrf.mxu0 }
 0x16b   : > { %v466_v41 = vadd.f32 %v3779_v27, %v465_v40  ;;  %v4197_v40 = vld [vmem:[#allocation2 + $0xa8] sm:$0xff] }
 0x16c   : > { %v4181_v45 = vpop.f32.mrf.mxu1 }
 0x16d   : > { %5297 = vst [vmem:[#allocation13_spill] sm:$0xff] %v4181_v45  ;;  %v507_v10 = vmax.f32 %v466_v41, 0.0  ;;  %3283 = vmatmul.msk.f32.gmra.mxu0 %vm512_vm2, %v4137_v56  ;;  %v3415_v41 = vld [vmem:[%s5252_s3 + $0xb8] sm:$0xff] }
 0x16e   : > { %v4185_v59 = vld [vmem:[#allocation2 + $0x151] sm:$0xff]  ;;  %2071 = vmatpush.msra.mxu3 %v3415_v41 }
 0x16f   : > { %5298 = vst [vmem:[#allocation14_spill] sm:$0xff] %v4185_v59  ;;  %v4187_v43 = vld [vmem:[#allocation2 + $0x150] sm:$0xff]  ;;  %3356 = vmatmul.msk.f32.gmra.mxu1 %vm512_vm2, %v4197_v40  ;;  %v3523_v41 = vld [vmem:[%s5252_s3 + $0x118] sm:$0xff] }
 0x170   : > { %596 = vst.msk [vmem:[#allocation2 + $0x159] sm:$0xff] %vm512_vm2, %v507_v10  ;;  %3268 = vmatmul.msk.f32.gmra.mxu3 %vm512_vm2, %v4185_v59  ;;  %v3450_v10 = vld [vmem:[%s5252_s3 + $0xd0] sm:$0xff]  ;;  %v3449_v59 = vld [vmem:[%s5252_s3 + $0xc8] sm:$0xff]  ;;  %2906 = vmatpush.msra.mxu2 %v3523_v41 }
 0x171   : > { %3300 = vmatmul.msk.f32.gmra.mxu2 %vm512_vm2, %v4187_v43  ;;  %2351 = vmatpush.msra.mxu0 %v3450_v10 }
 0x172   : > { %v468_v45 = vpop.f32.mrf.mxu0 }
 0x173   : > { %v469_v22 = vadd.f32 %v3779_v27, %v468_v45  ;;  %2352 = vmatpush.msra.mxu0 %v3449_v59  ;;  %v3487_v45 = vld [vmem:[%s5252_s3 + $0xf8] sm:$0xff] }
 0x174   : > { %v4211_v17 = vpop.f32.mrf.mxu1  ;;  %2628 = vmatpush.msra.mxu1 %v3487_v45 }
 0x175   : > { %5299 = vst [vmem:[#allocation15_spill] sm:$0xff] %v4211_v17  ;;  %v508_v6 = vmax.f32 %v469_v22, 0.0  ;;  %3284 = vmatmul.msk.f32.gmra.mxu0 %vm512_vm2, %v4158_v34  ;;  %v4230_v22 = vld [vmem:[#allocation2 + $0xb0] sm:$0xff] }
 0x176   : > { %2353 = vmatpush.msra.mxu0 %v3448_v4 }
 0x177   : > { %v4221_v10 = vld [vmem:[#allocation2 + $0x159] sm:$0xff]  ;;  %597 = vst.msk [vmem:[#allocation2 + $0x169] sm:$0xff] %vm512_vm2, %v508_v6  ;;  %3357 = vmatmul.msk.f32.gmra.mxu1 %vm512_vm2, %v4230_v22 }
 0x178   : > { %5300 = vst [vmem:[#allocation16_spill] sm:$0xff] %v4221_v10  ;;  %v4223_v51 = vld [vmem:[#allocation2 + $0x158] sm:$0xff]  ;;  %3269 = vmatmul.msk.f32.gmra.mxu3 %vm512_vm2, %v4221_v10 }
 0x179   : > { %3301 = vmatmul.msk.f32.gmra.mxu2 %vm512_vm2, %v4223_v51 }
 0x17a   : > { %v471_v59 = vpop.f32.mrf.mxu0 }
 0x17b   : > { %v472_v4 = vadd.f32 %v3779_v27, %v471_v59 }
 0x17c   : > { %v4238_v6 = vpop.f32.mrf.mxu1 }
 0x17d   : > { %5301 = vst [vmem:[#allocation17_spill] sm:$0xff] %v4238_v6  ;;  %v509_v41 = vmax.f32 %v472_v4, 0.0  ;;  %3285 = vmatmul.msk.f32.gmra.mxu0 %vm512_vm2, %v4176_v15 }
 0x17e   : > { %v4242_v17 = vld [vmem:[#allocation2 + $0x169] sm:$0xff] }
 0x17f   : > { %5302 = vst [vmem:[#allocation18_spill] sm:$0xff] %v4242_v17  ;;  %v4244_v10 = vld [vmem:[#allocation2 + $0x168] sm:$0xff]  ;;  %3358 = vmatmul.msk.f32.gmra.mxu1 %vm512_vm2, %v3963_v61 }
 0x180   : > { %598 = vst.msk [vmem:[#allocation2 + $0x171] sm:$0xff] %vm512_vm2, %v509_v41  ;;  %3270 = vmatmul.msk.f32.gmra.mxu3 %vm512_vm2, %v4242_v17 }
 0x181   : > { %3302 = vmatmul.msk.f32.gmra.mxu2 %vm512_vm2, %v4244_v10 }
 0x182   : > { %v474_v45 = vpop.f32.mrf.mxu0 }
 0x183   : > { %v475_v59 = vadd.f32 %v3779_v27, %v474_v45 }
 0x184   : > { %v4254_v4 = vpop.f32.mrf.mxu1 }
 0x185   : > { %5303 = vst [vmem:[#allocation19_spill] sm:$0xff] %v4254_v4  ;;  %v510_v6 = vmax.f32 %v475_v59, 0.0  ;;  %3286 = vmatmul.msk.f32.gmra.mxu0 %vm512_vm2, %v4197_v40  ;;  %v1092_v4 = vld [vmem:[#allocation2 + $0x2] sm:$0xff] }
 0x187   : > { %v4258_v58 = vld [vmem:[#allocation2 + $0x171] sm:$0xff]  ;;  %599 = vst.msk [vmem:[#allocation2 + $0x181] sm:$0xff] %vm512_vm2, %v510_v6  ;;  %3359 = vmatmul.msk.f32.gmra.mxu1 %vm512_vm2, %v3980_v9 }
 0x188   : > { %5304 = vst [vmem:[#allocation20_spill] sm:$0xff] %v4258_v58  ;;  %v4260_v41 = vld [vmem:[#allocation2 + $0x170] sm:$0xff]  ;;  %3271 = vmatmul.msk.f32.gmra.mxu3 %vm512_vm2, %v4258_v58 }
 0x189   : > { %3303 = vmatmul.msk.f32.gmra.mxu2 %vm512_vm2, %v4260_v41 }
 0x18a   : > { %v477_v45 = vpop.f32.mrf.mxu0 }
 0x18b   : > { %v478_v59 = vadd.f32 %v3779_v27, %v477_v45  ;;  %v1093_v45 = vld [vmem:[#allocation2 + $0xa] sm:$0xff] }
 0x18c   : > { %v4270_v25 = vpop.f32.mrf.mxu1 }
 0x18d   : > { %v511_v17 = vmax.f32 %v478_v59, 0.0  ;;  %3287 = vmatmul.msk.f32.gmra.mxu0 %vm512_vm2, %v4230_v22 }
 0x18f   : > { %600 = vst.msk [vmem:[#allocation2 + $0x189] sm:$0xff] %vm512_vm2, %v511_v17  ;;  %3360 = vmatmul.msk.f32.gmra.mxu1 %vm512_vm2, %v3997_v20 }
 0x190   : > { %3308 = vmatmul.msk.f32.vlgmr.msrb.gmra.mxu3 %vm512_vm2, %v1092_v4 }
 0x191   : > { %3380 = vmatmul.msk.f32.vlgmr.msrb.gmra.mxu2 %vm512_vm2, %v3817_v37 }
 0x192   : > { %v835_v6 = vpop.f32.mrf.mxu3 }
 0x193   : > { %v1044_v58 = vpop.f32.mrf.mxu2 }
 0x194   : > { %v4280_v27 = vadd.f32 %v1044_v58, %v835_v6  ;;  %v4282_v59 = vpop.f32.mrf.mxu1  ;;  %v4297_v6 = vld [vmem:[#allocation2 + $0x1a] sm:$0xff] }
 0x195   : > { %3452 = vmatmul.msk.f32.vlgmr.msra.gmra.mxu0 %vm512_vm2, %v4004_v21 }
 0x197   : > { %3361 = vmatmul.msk.f32.gmra.mxu1 %vm512_vm2, %v4014_v28 }
 0x198   : > { %3309 = vmatmul.msk.f32.gmra.mxu3 %vm512_vm2, %v1093_v45 }
 0x199   : > { %3381 = vmatmul.msk.f32.gmra.mxu2 %vm512_vm2, %v3825_v42 }
 0x19a   : > { %v838_v37 = vpop.f32.mrf.mxu3 }
 0x19b   : > { %v1047_v17 = vpop.f32.mrf.mxu2 }
 0x19c   : > { %v4291_v4 = vadd.f32 %v1047_v17, %v838_v37  ;;  %v4293_v58 = vpop.f32.mrf.mxu1  ;;  %v4319_v17 = vpop.f32.mrf.mxu0 }
 0x19d   : > { %3453 = vmatmul.msk.f32.gmra.mxu0 %vm512_vm2, %v4021_v29  ;;  %v4311_v29 = vld [vmem:[#allocation2 + $0x22] sm:$0xff] }
 0x19e   : > { %5305 = vst [vmem:[#allocation21_spill] sm:$0xff] %v4291_v4  ;;  %v4347_v4 = vld [vmem:[#allocation2 + $0x3a] sm:$0xff] }
 0x19f   : > { %3362 = vmatmul.msk.f32.gmra.mxu1 %vm512_vm2, %v4031_v36  ;;  %5309 = vst [vmem:[#allocation25_spill] sm:$0xff] %v4347_v4 }
 0x1a0   : > { %3310 = vmatmul.msk.f32.gmra.mxu3 %vm512_vm2, %v4297_v6 }
 0x1a1   : > { %3382 = vmatmul.msk.f32.gmra.mxu2 %vm512_vm2, %v3833_v47 }
 0x1a2   : > { %v841_v42 = vpop.f32.mrf.mxu3 }
 0x1a3   : > { %v1050_v21 = vpop.f32.mrf.mxu2 }
 0x1a4   : > { %v4305_v45 = vadd.f32 %v1050_v21, %v841_v42  ;;  %v4307_v37 = vpop.f32.mrf.mxu1 }
 0x1a5   : > { %3454 = vmatmul.msk.f32.gmra.mxu0 %vm512_vm2, %v4038_v38 }
 0x1a6   : > { %5306 = vst [vmem:[#allocation22_spill] sm:$0xff] %v4305_v45  ;;  %v4327_v45 = vld [vmem:[#allocation2 + $0x32] sm:$0xff] }
 0x1a7   : > { %3363 = vmatmul.msk.f32.gmra.mxu1 %vm512_vm2, %v4052_v49 }
 0x1a8   : > { %3311 = vmatmul.msk.f32.gmra.mxu3 %vm512_vm2, %v4311_v29 }
 0x1a9   : > { %3383 = vmatmul.msk.f32.gmra.mxu2 %vm512_vm2, %v3841_v52  ;;  %v3414_v52 = vld [vmem:[%s5252_s3 + $0xb0] sm:$0xff] }
 0x1aa   : > { %v844_v47 = vpop.f32.mrf.mxu3  ;;  %2072 = vmatpush.msra.mxu3 %v3414_v52 }
 0x1ab   : > { %v1053_v42 = vpop.f32.mrf.mxu2 }
 0x1ac   : > { %v4321_v21 = vadd.f32 %v1053_v42, %v844_v47  ;;  %v4325_v38 = vpop.f32.mrf.mxu1 }
 0x1ad   : > { %3455 = vmatmul.msk.f32.gmra.mxu0 %vm512_vm2, %v4059_v50 }
 0x1ae   : > { %5307 = vst [vmem:[#allocation23_spill] sm:$0xff] %v4321_v21  ;;  %v4340_v21 = vpop.f32.mrf.mxu0 }
 0x1af   : > { %3364 = vmatmul.msk.f32.gmra.mxu1 %vm512_vm2, %v4073_v0 }
 0x1b0   : > { %3312 = vmatmul.msk.f32.gmra.mxu3 %vm512_vm2, %v4327_v45 }
 0x1b1   : > { %3384 = vmatmul.msk.f32.gmra.mxu2 %vm512_vm2, %v3849_v57  ;;  %v3522_v57 = vld [vmem:[%s5252_s3 + $0x110] sm:$0xff] }
 0x1b2   : > { %v847_v47 = vpop.f32.mrf.mxu3  ;;  %2907 = vmatpush.msra.mxu2 %v3522_v57  ;;  %v4364_v57 = vld [vmem:[#allocation2 + $0x4a] sm:$0xff] }
 0x1b3   : > { %v1056_v50 = vpop.f32.mrf.mxu2  ;;  %5311 = vst [vmem:[#allocation27_spill] sm:$0xff] %v4364_v57 }
 0x1b4   : > { %v4338_v42 = vadd.f32 %v1056_v50, %v847_v47  ;;  %v4353_v52 = vpop.f32.mrf.mxu1 }
 0x1b5   : > { %3456 = vmatmul.msk.f32.gmra.mxu0 %vm512_vm2, %v4080_v1  ;;  %v3486_v1 = vld [vmem:[%s5252_s3 + $0xf0] sm:$0xff] }
 0x1b6   : > { %5308 = vst [vmem:[#allocation24_spill] sm:$0xff] %v4338_v42  ;;  %2629 = vmatpush.msra.mxu1 %v3486_v1 }
 0x1b7   : > { %3365 = vmatmul.msk.f32.gmra.mxu1 %vm512_vm2, %v4091_v12 }
 0x1b8   : > { %3313 = vmatmul.msk.f32.gmra.mxu3 %vm512_vm2, %v4347_v4 }
 0x1b9   : > { %3385 = vmatmul.msk.f32.gmra.mxu2 %vm512_vm2, %v3857_v62  ;;  %v4366_v62 = vpop.f32.mrf.mxu0 }
 0x1ba   : > { %v850_v47 = vpop.f32.mrf.mxu3 }
 0x1bb   : > { %v1059_v50 = vpop.f32.mrf.mxu2 }
 0x1bc   : > { %v4360_v42 = vadd.f32 %v1059_v50, %v850_v47  ;;  %v4374_v1 = vpop.f32.mrf.mxu1 }
 0x1bd   : > { %3457 = vmatmul.msk.f32.gmra.mxu0 %vm512_vm2, %v4098_v14  ;;  %v4380_v14 = vld [vmem:[#allocation2 + $0x52] sm:$0xff] }
 0x1be   : > { %5310 = vst [vmem:[#allocation26_spill] sm:$0xff] %v4360_v42 }
 0x1bf   : > { %3366 = vmatmul.msk.f32.gmra.mxu1 %vm512_vm2, %v4109_v30  ;;  %5313 = vst [vmem:[#allocation29_spill] sm:$0xff] %v4380_v14 }
 0x1c0   : > { %3314 = vmatmul.msk.f32.gmra.mxu3 %vm512_vm2, %v4364_v57 }
 0x1c1   : > { %3386 = vmatmul.msk.f32.gmra.mxu2 %vm512_vm2, %v3865_v3  ;;  %v4388_v3 = vpop.f32.mrf.mxu0 }
 0x1c2   : > { %v853_v47 = vpop.f32.mrf.mxu3 }
 0x1c3   : > { %v1062_v50 = vpop.f32.mrf.mxu2 }
 0x1c4   : > { %v4376_v42 = vadd.f32 %v1062_v50, %v853_v47  ;;  %v4390_v47 = vpop.f32.mrf.mxu1 }
 0x1c5   : > { %3458 = vmatmul.msk.f32.gmra.mxu0 %vm512_vm2, %v4116_v31  ;;  %v4396_v31 = vld [vmem:[#allocation2 + $0x62] sm:$0xff] }
 0x1c6   : > { %5312 = vst [vmem:[#allocation28_spill] sm:$0xff] %v4376_v42 }
 0x1c7   : > { %3367 = vmatmul.msk.f32.gmra.mxu1 %vm512_vm2, %v4130_v55  ;;  %5315 = vst [vmem:[#allocation31_spill] sm:$0xff] %v4396_v31 }
 0x1c8   : > { %3315 = vmatmul.msk.f32.gmra.mxu3 %vm512_vm2, %v4380_v14 }
 0x1c9   : > { %3387 = vmatmul.msk.f32.gmra.mxu2 %vm512_vm2, %v3873_v8  ;;  %v4404_v42 = vpop.f32.mrf.mxu0 }
 0x1ca   : > { %v856_v57 = vpop.f32.mrf.mxu3 }
 0x1cb   : > { %v1065_v4 = vpop.f32.mrf.mxu2 }
 0x1cc   : > { %v4392_v50 = vadd.f32 %v1065_v4, %v856_v57  ;;  %v4412_v57 = vld [vmem:[#allocation2 + $0x6a] sm:$0xff] }
 0x1cd   : > { %3459 = vmatmul.msk.f32.gmra.mxu0 %vm512_vm2, %v4137_v56  ;;  %v4410_v56 = vpop.f32.mrf.mxu1  ;;  %5317 = vst [vmem:[#allocation33_spill] sm:$0xff] %v4412_v57 }
 0x1ce   : > { %5314 = vst [vmem:[#allocation30_spill] sm:$0xff] %v4392_v50 }
 0x1cf   : > { %3368 = vmatmul.msk.f32.gmra.mxu1 %vm512_vm2, %v4151_v23 }
 0x1d0   : > { %3316 = vmatmul.msk.f32.gmra.mxu3 %vm512_vm2, %v4396_v31 }
 0x1d1   : > { %3388 = vmatmul.msk.f32.gmra.mxu2 %vm512_vm2, %v3881_v13 }
 0x1d2   : > { %v859_v8 = vpop.f32.mrf.mxu3 }
 0x1d3   : > { %v1068_v14 = vpop.f32.mrf.mxu2 }
 0x1d4   : > { %v4406_v4 = vadd.f32 %v1068_v14, %v859_v8  ;;  %v4422_v8 = vpop.f32.mrf.mxu0 }
 0x1d5   : > { %3460 = vmatmul.msk.f32.gmra.mxu0 %vm512_vm2, %v4158_v34  ;;  %v4426_v34 = vld [vmem:[#allocation2 + $0x7a] sm:$0xff] }
 0x1d6   : > { %5316 = vst [vmem:[#allocation32_spill] sm:$0xff] %v4406_v4 }
 0x1d7   : > { %3369 = vmatmul.msk.f32.gmra.mxu1 %vm512_vm2, %v4169_v5  ;;  %5319 = vst [vmem:[#allocation35_spill] sm:$0xff] %v4426_v34 }
 0x1d8   : > { %3317 = vmatmul.msk.f32.gmra.mxu3 %vm512_vm2, %v4412_v57 }
 0x1d9   : > { %3389 = vmatmul.msk.f32.gmra.mxu2 %vm512_vm2, %v3889_v18  ;;  %v4432_v18 = vpop.f32.mrf.mxu1 }
 0x1db   : > { %v862_v13 = vpop.f32.mrf.mxu3 }
 0x1dc   : > { %v1071_v50 = vpop.f32.mrf.mxu2  ;;  %v4442_v4 = vpop.f32.mrf.mxu0 }
 0x1dd   : > { %v4420_v14 = vadd.f32 %v1071_v50, %v862_v13  ;;  %3461 = vmatmul.msk.f32.gmra.mxu0 %vm512_vm2, %v4176_v15  ;;  %v4440_v15 = vld [vmem:[#allocation2 + $0x82] sm:$0xff] }
 0x1de   : > { %5321 = vst [vmem:[#allocation37_spill] sm:$0xff] %v4440_v15 }
 0x1df   : > { %5318 = vst [vmem:[#allocation34_spill] sm:$0xff] %v4420_v14  ;;  %3370 = vmatmul.msk.f32.gmra.mxu1 %vm512_vm2, %v4187_v43 }
 0x1e0   : > { %3318 = vmatmul.msk.f32.gmra.mxu3 %vm512_vm2, %v4426_v34 }
 0x1e1   : > { %3390 = vmatmul.msk.f32.gmra.mxu2 %vm512_vm2, %v3921_v32  ;;  %v4450_v32 = vpop.f32.mrf.mxu1 }
 0x1e3   : > { %v865_v50 = vpop.f32.mrf.mxu3 }
 0x1e4   : > { %v1074_v13 = vpop.f32.mrf.mxu2 }
 0x1e5   : > { %v4436_v14 = vadd.f32 %v1074_v13, %v865_v50  ;;  %3462 = vmatmul.msk.f32.gmra.mxu0 %vm512_vm2, %v4197_v40  ;;  %v3485_v40 = vld [vmem:[%s5252_s3 + $0xe8] sm:$0xff] }
 0x1e6   : > { %2630 = vmatpush.msra.mxu1 %v3485_v40 }
 0x1e7   : > { %5320 = vst [vmem:[#allocation36_spill] sm:$0xff] %v4436_v14  ;;  %3371 = vmatmul.msk.f32.gmra.mxu1 %vm512_vm2, %v4223_v51 }
 0x1e8   : > { %3319 = vmatmul.msk.f32.gmra.mxu3 %vm512_vm2, %v4440_v15  ;;  %v4459_v15 = vld [vmem:[#allocation2 + $0x92] sm:$0xff] }
 0x1e9   : > { %3391 = vmatmul.msk.f32.gmra.mxu2 %vm512_vm2, %v3932_v39  ;;  %5323 = vst [vmem:[#allocation39_spill] sm:$0xff] %v4459_v15  ;;  %v3484_v39 = vld [vmem:[%s5252_s3 + $0xe0] sm:$0xff] }
 0x1ea   : > { %2631 = vmatpush.msra.mxu1 %v3484_v39  ;;  %v3521_v39 = vld [vmem:[%s5252_s3 + $0x108] sm:$0xff] }
 0x1eb   : > { %v868_v50 = vpop.f32.mrf.mxu3  ;;  %2908 = vmatpush.msra.mxu2 %v3521_v39 }
 0x1ec   : > { %v1077_v13 = vpop.f32.mrf.mxu2 }
 0x1ed   : > { %v4452_v14 = vadd.f32 %v1077_v13, %v868_v50  ;;  %3463 = vmatmul.msk.f32.gmra.mxu0 %vm512_vm2, %v4230_v22  ;;  %v3413_v50 = vld [vmem:[%s5252_s3 + $0xa8] sm:$0xff]  ;;  %v4473_v22 = vpop.f32.mrf.mxu0 }
 0x1ee   : > { %2073 = vmatpush.msra.mxu3 %v3413_v50 }
 0x1ef   : > { %5322 = vst [vmem:[#allocation38_spill] sm:$0xff] %v4452_v14  ;;  %3372 = vmatmul.msk.f32.gmra.mxu1 %vm512_vm2, %v4244_v10  ;;  %v4475_v14 = vpop.f32.mrf.mxu1 }
 0x1f0   : > { %3320 = vmatmul.msk.f32.gmra.mxu3 %vm512_vm2, %v4459_v15  ;;  %v4518_v15 = vld [vmem:[#allocation2 + $0xb2] sm:$0xff] }
 0x1f1   : > { %3392 = vmatmul.msk.f32.gmra.mxu2 %vm512_vm2, %v3943_v46  ;;  %v4481_v46 = vld [vmem:[#allocation2 + $0x9a] sm:$0xff]  ;;  %5329 = vst [vmem:[#allocation45_spill] sm:$0xff] %v4518_v15 }
 0x1f2   : > { %5325 = vst [vmem:[#allocation41_spill] sm:$0xff] %v4481_v46 }
 0x1f3   : > { %v871_v13 = vpop.f32.mrf.mxu3 }
 0x1f4   : > { %v1080_v40 = vpop.f32.mrf.mxu2 }
 0x1f5   : > { %v4477_v34 = vadd.f32 %v1080_v40, %v871_v13  ;;  %3464 = vmatmul.msk.f32.gmra.mxu0 %vm512_vm2, %v3963_v61  ;;  %v4492_v13 = vpop.f32.mrf.mxu0 }
 0x1f7   : > { %5324 = vst [vmem:[#allocation40_spill] sm:$0xff] %v4477_v34  ;;  %3373 = vmatmul.msk.f32.gmra.mxu1 %vm512_vm2, %v4260_v41  ;;  %v4498_v34 = vld [vmem:[#allocation2 + $0x180] sm:$0xff] }
 0x1f8   : > { %3321 = vmatmul.msk.f32.gmra.mxu3 %vm512_vm2, %v4481_v46  ;;  %v4502_v46 = vld [vmem:[#allocation2 + $0xaa] sm:$0xff] }
 0x1f9   : > { %3393 = vmatmul.msk.f32.gmra.mxu2 %vm512_vm2, %v3951_v53  ;;  %v4500_v53 = vpop.f32.mrf.mxu1  ;;  %5327 = vst [vmem:[#allocation43_spill] sm:$0xff] %v4502_v46 }
 0x1fb   : > { %v874_v50 = vpop.f32.mrf.mxu3 }
 0x1fc   : > { %v1083_v61 = vpop.f32.mrf.mxu2 }
 0x1fd   : > { %v4494_v40 = vadd.f32 %v1083_v61, %v874_v50  ;;  %3465 = vmatmul.msk.f32.gmra.mxu0 %vm512_vm2, %v3980_v9  ;;  %v4512_v9 = vpop.f32.mrf.mxu0 }
 0x1ff   : > { %5326 = vst [vmem:[#allocation42_spill] sm:$0xff] %v4494_v40  ;;  %3374 = vmatmul.msk.f32.gmra.mxu1 %vm512_vm2, %v4498_v34  ;;  %v4516_v40 = vld [vmem:[#allocation2 + $0x188] sm:$0xff] }
 0x200   : > { %3322 = vmatmul.msk.f32.gmra.mxu3 %vm512_vm2, %v4502_v46 }
 0x201   : > { %3394 = vmatmul.msk.f32.gmra.mxu2 %vm512_vm2, %v3961_v60  ;;  %v4524_v60 = vpop.f32.mrf.mxu1 }
 0x203   : > { %v877_v39 = vpop.f32.mrf.mxu3 }
 0x204   : > { %v1086_v50 = vpop.f32.mrf.mxu2 }
 0x205   : > { %v4510_v61 = vadd.f32 %v1086_v50, %v877_v39  ;;  %3466 = vmatmul.msk.f32.gmra.mxu0 %vm512_vm2, %v3997_v20  ;;  %v4532_v20 = vld [vmem:[#allocation2 + $0xc2] sm:$0xff]  ;;  %v4534_v46 = vpop.f32.mrf.mxu0 }
 0x206   : > { %5331 = vst [vmem:[#allocation47_spill] sm:$0xff] %v4532_v20 }
 0x207   : > { %5328 = vst [vmem:[#allocation44_spill] sm:$0xff] %v4510_v61  ;;  %3375 = vmatmul.msk.f32.gmra.mxu1 %vm512_vm2, %v4516_v40 }
 0x208   : > { %3323 = vmatmul.msk.f32.gmra.mxu3 %vm512_vm2, %v4518_v15 }
 0x209   : > { %3395 = vmatmul.msk.f32.gmra.mxu2 %vm512_vm2, %v3978_v7  ;;  %v2483_v7 = vld [vmem:[#allocation2 + $0x31] sm:$0xff] }
 0x20b   : > { %v880_v39 = vpop.f32.mrf.mxu3 }
 0x20c   : > { %v1089_v50 = vpop.f32.mrf.mxu2 }
 0x20d   : > { %v4528_v61 = vadd.f32 %v1089_v50, %v880_v39  ;;  %3467 = vmatmul.msk.f32.gmra.mxu0 %vm512_vm2, %v4014_v28  ;;  %v997_v39 = vadd.f32 %v4319_v17, %v3956_v54  ;;  %v4543_v50 = vpop.f32.mrf.mxu1  ;;  %v2484_v54 = vld [vmem:[#allocation2 + $0x39] sm:$0xff] }
 0x20f   : > { %5330 = vst [vmem:[#allocation46_spill] sm:$0xff] %v4528_v61  ;;  %3488 = vmatmul.msk.f32.vlgmr.msra.gmra.mxu1 %vm512_vm2, %v2483_v7 }
 0x210   : > { %3324 = vmatmul.msk.f32.gmra.mxu3 %vm512_vm2, %v4532_v20  ;;  %v4548_v20 = vld [vmem:[#allocation2 + $0xca] sm:$0xff] }
 0x211   : > { %3396 = vmatmul.msk.f32.gmra.mxu2 %vm512_vm2, %v3995_v19  ;;  %v1000_v19 = vadd.f32 %v4340_v21, %v3974_v2  ;;  %v2485_v2 = vld [vmem:[#allocation2 + $0x49] sm:$0xff]  ;;  %v1003_v21 = vadd.f32 %v4366_v62, %v3992_v16  ;;  %v2486_v16 = vld [vmem:[#allocation2 + $0x51] sm:$0xff] }
 0x213   : > { %v1242_v61 = vpop.f32.mrf.mxu3 }
 0x214   : > { %v1338_v28 = vadd.f32 %v1242_v61, %v997_v39  ;;  %v1798_v15 = vpop.f32.mrf.mxu2 }
 0x215   : > { %3468 = vmatmul.msk.f32.gmra.mxu0 %vm512_vm2, %v4031_v36  ;;  %v4561_v7 = vpop.f32.mrf.mxu1 }
 0x216   : > { %v1616_v57 = vadd.f32 %v4270_v25, %v1338_v28  ;;  %v4559_v25 = vpop.f32.mrf.mxu0 }
 0x217   : > { %3489 = vmatmul.msk.f32.gmra.mxu1 %vm512_vm2, %v2484_v54 }
 0x218   : > { %v4550_v31 = vadd.f32 %v1798_v15, %v1616_v57  ;;  %3325 = vmatmul.msk.f32.gmra.mxu3 %vm512_vm2, %v4548_v20  ;;  %v4566_v15 = vld [vmem:[#allocation2 + $0xda] sm:$0xff] }
 0x219   : > { %3397 = vmatmul.msk.f32.gmra.mxu2 %vm512_vm2, %v4012_v26 }
 0x21b   : > { %v1245_v17 = vpop.f32.mrf.mxu3 }
 0x21c   : > { %v1339_v36 = vadd.f32 %v1245_v17, %v1000_v19  ;;  %v1801_v61 = vpop.f32.mrf.mxu2  ;;  %v4584_v17 = vld [vmem:[#allocation2 + $0xe2] sm:$0xff] }
 0x21d   : > { %3469 = vmatmul.msk.f32.gmra.mxu0 %vm512_vm2, %v4052_v49  ;;  %v4582_v19 = vpop.f32.mrf.mxu1 }
 0x21e   : > { %v1617_v57 = vadd.f32 %v4282_v59, %v1339_v36  ;;  %v4577_v39 = vpop.f32.mrf.mxu0 }
 0x21f   : > { %3490 = vmatmul.msk.f32.gmra.mxu1 %vm512_vm2, %v2485_v2  ;;  %v4600_v2 = vld [vmem:[#allocation2 + $0xf2] sm:$0xff] }
 0x220   : > { %v4568_v26 = vadd.f32 %v1801_v61, %v1617_v57  ;;  %3326 = vmatmul.msk.f32.gmra.mxu3 %vm512_vm2, %v4566_v15 }
 0x221   : > { %3398 = vmatmul.msk.f32.gmra.mxu2 %vm512_vm2, %v4029_v35 }
 0x223   : > { %v1248_v59 = vpop.f32.mrf.mxu3 }
 0x224   : > { %v1340_v49 = vadd.f32 %v1248_v59, %v1003_v21  ;;  %v1804_v28 = vpop.f32.mrf.mxu2 }
 0x225   : > { %3470 = vmatmul.msk.f32.gmra.mxu0 %vm512_vm2, %v4073_v0 }
 0x226   : > { %v1618_v54 = vadd.f32 %v4293_v58, %v1340_v49  ;;  %v1006_v58 = vadd.f32 %v4388_v3, %v4009_v24  ;;  %v4595_v61 = vpop.f32.mrf.mxu0  ;;  %v2487_v24 = vld [vmem:[#allocation2 + $0x61] sm:$0xff]  ;;  %v4611_v3 = vpop.f32.mrf.mxu1 }
 0x227   : > { %3491 = vmatmul.msk.f32.gmra.mxu1 %vm512_vm2, %v2486_v16 }
 0x228   : > { %v4586_v35 = vadd.f32 %v1804_v28, %v1618_v54  ;;  %3327 = vmatmul.msk.f32.gmra.mxu3 %vm512_vm2, %v4584_v17 }
 0x229   : > { %3399 = vmatmul.msk.f32.gmra.mxu2 %vm512_vm2, %v4050_v48  ;;  %v3412_v48 = vld [vmem:[%s5252_s3 + $0xa0] sm:$0xff] }
 0x22a   : > { %2074 = vmatpush.msra.mxu3 %v3412_v48 }
 0x22b   : > { %v1251_v62 = vpop.f32.mrf.mxu3 }
 0x22c   : > { %v1341_v0 = vadd.f32 %v1251_v62, %v1006_v58  ;;  %v1807_v36 = vpop.f32.mrf.mxu2 }
 0x22d   : > { %3471 = vmatmul.msk.f32.gmra.mxu0 %vm512_vm2, %v4091_v12  ;;  %v1009_v12 = vadd.f32 %v4404_v42, %v4026_v33  ;;  %v2488_v33 = vld [vmem:[#allocation2 + $0x69] sm:$0xff] }
 0x22e   : > { %v1619_v57 = vadd.f32 %v4307_v37, %v1341_v0  ;;  %v4621_v54 = vpop.f32.mrf.mxu0  ;;  %v4635_v42 = vpop.f32.mrf.mxu1 }
 0x22f   : > { %3492 = vmatmul.msk.f32.gmra.mxu1 %vm512_vm2, %v2487_v24  ;;  %v5332_v24 = vld [vmem:[#allocation6_spill] sm:$0xff] }
 0x230   : > { %v4602_v21 = vadd.f32 %v1807_v36, %v1619_v57  ;;  %3328 = vmatmul.msk.f32.gmra.mxu3 %vm512_vm2, %v4600_v2 }
 0x231   : > { %3400 = vmatmul.msk.f32.gmra.mxu2 %vm512_vm2, %v4071_v63  ;;  %v4619_v63 = vld [vmem:[#allocation2 + $0xfa] sm:$0xff] }
 0x233   : > { %v1254_v37 = vpop.f32.mrf.mxu3 }
 0x234   : > { %v1342_v59 = vadd.f32 %v1254_v37, %v1009_v12  ;;  %v1810_v49 = vpop.f32.mrf.mxu2 }
 0x235   : > { %3472 = vmatmul.msk.f32.gmra.mxu0 %vm512_vm2, %v4109_v30  ;;  %v1012_v30 = vadd.f32 %v4422_v8, %v4046_v44  ;;  %v2489_v44 = vld [vmem:[#allocation2 + $0x79] sm:$0xff]  ;;  %v5333_v8 = vld [vmem:[#allocation3_spill] sm:$0xff] }
 0x236   : > { %v1620_v28 = vadd.f32 %v4325_v38, %v1342_v59  ;;  %v3520_v38 = vld [vmem:[%s5252_s3 + $0x100] sm:$0xff]  ;;  %v1015_v48 = vadd.f32 %v4442_v4, %v5333_v8  ;;  %v4653_v59 = vpop.f32.mrf.mxu1  ;;  %v5334_v4 = vld [vmem:[#allocation8_spill] sm:$0xff] }
 0x237   : > { %3493 = vmatmul.msk.f32.gmra.mxu1 %vm512_vm2, %v2488_v33  ;;  %2909 = vmatpush.msra.mxu2 %v3520_v38  ;;  %v2490_v38 = vld [vmem:[#allocation2 + $0x81] sm:$0xff] }
 0x238   : > { %v4623_v16 = vadd.f32 %v1810_v49, %v1620_v28  ;;  %3329 = vmatmul.msk.f32.gmra.mxu3 %vm512_vm2, %v4619_v63  ;;  %v4658_v28 = vld [vmem:[#allocation2 + $0x112] sm:$0xff] }
 0x239   : > { %3401 = vmatmul.msk.f32.gmra.mxu2 %vm512_vm2, %v4089_v11  ;;  %v4640_v11 = vld [vmem:[#allocation2 + $0x10a] sm:$0xff] }
 0x23b   : > { %v1257_v58 = vpop.f32.mrf.mxu3 }
 0x23c   : > { %v1343_v62 = vadd.f32 %v1257_v58, %v1012_v30  ;;  %v1813_v0 = vpop.f32.mrf.mxu2  ;;  %v5335_v30 = vld [vmem:[#allocation4_spill] sm:$0xff] }
 0x23d   : > { %3473 = vmatmul.msk.f32.gmra.mxu0 %vm512_vm2, %v4130_v55  ;;  %v1018_v58 = vadd.f32 %v4473_v22, %v5335_v30  ;;  %v5336_v22 = vld [vmem:[#allocation10_spill] sm:$0xff] }
 0x23e   : > { %v1621_v36 = vadd.f32 %v4353_v52, %v1343_v62  ;;  %v4651_v52 = vpop.f32.mrf.mxu0 }
 0x23f   : > { %3494 = vmatmul.msk.f32.gmra.mxu1 %vm512_vm2, %v2489_v44  ;;  %v4676_v44 = vld [vmem:[#allocation2 + $0x122] sm:$0xff] }
 0x240   : > { %v4642_v57 = vadd.f32 %v1813_v0, %v1621_v36  ;;  %3330 = vmatmul.msk.f32.gmra.mxu3 %vm512_vm2, %v4640_v11 }
 0x241   : > { %3402 = vmatmul.msk.f32.gmra.mxu2 %vm512_vm2, %v5332_v24  ;;  %v4674_v24 = vpop.f32.mrf.mxu1 }
 0x243   : > { %v1260_v12 = vpop.f32.mrf.mxu3 }
 0x244   : > { %v1344_v55 = vadd.f32 %v1260_v12, %v1015_v48  ;;  %v1816_v37 = vpop.f32.mrf.mxu2  ;;  %v2491_v48 = vld [vmem:[#allocation2 + $0x91] sm:$0xff]  ;;  %v5337_v12 = vld [vmem:[#allocation5_spill] sm:$0xff] }
 0x245   : > { %3474 = vmatmul.msk.f32.gmra.mxu0 %vm512_vm2, %v4151_v23 }
 0x246   : > { %v1622_v49 = vadd.f32 %v4374_v1, %v1344_v55  ;;  %v4669_v62 = vpop.f32.mrf.mxu0 }
 0x247   : > { %3495 = vmatmul.msk.f32.gmra.mxu1 %vm512_vm2, %v2490_v38  ;;  %v4692_v38 = vld [vmem:[#allocation2 + $0x12a] sm:$0xff] }
 0x248   : > { %v4660_v33 = vadd.f32 %v1816_v37, %v1622_v49  ;;  %3331 = vmatmul.msk.f32.gmra.mxu3 %vm512_vm2, %v4658_v28 }
 0x249   : > { %3403 = vmatmul.msk.f32.gmra.mxu2 %vm512_vm2, %v5334_v4 }
 0x24b   : > { %v1263_v1 = vpop.f32.mrf.mxu3 }
 0x24c   : > { %v1345_v23 = vadd.f32 %v1263_v1, %v1018_v58  ;;  %v1819_v0 = vpop.f32.mrf.mxu2  ;;  %v5338_v58 = vld [vmem:[#allocation12_spill] sm:$0xff]  ;;  %v4700_v1 = vpop.f32.mrf.mxu1 }
 0x24d   : > { %3475 = vmatmul.msk.f32.gmra.mxu0 %vm512_vm2, %v4169_v5 }
 0x24e   : > { %v1623_v36 = vadd.f32 %v4390_v47, %v1345_v23  ;;  %v1021_v47 = vadd.f32 %v4492_v13, %v5337_v12  ;;  %v4687_v49 = vpop.f32.mrf.mxu0  ;;  %v2492_v13 = vld [vmem:[#allocation2 + $0x99] sm:$0xff]  ;;  %v5339_v23 = vld [vmem:[#allocation7_spill] sm:$0xff] }
 0x24f   : > { %3496 = vmatmul.msk.f32.gmra.mxu1 %vm512_vm2, %v2491_v48  ;;  %v4708_v48 = vld [vmem:[#allocation2 + $0x13a] sm:$0xff] }
 0x250   : > { %v4678_v8 = vadd.f32 %v1819_v0, %v1623_v36  ;;  %3332 = vmatmul.msk.f32.gmra.mxu3 %vm512_vm2, %v4676_v44 }
 0x251   : > { %3404 = vmatmul.msk.f32.gmra.mxu2 %vm512_vm2, %v5336_v22 }
 0x253   : > { %v1266_v55 = vpop.f32.mrf.mxu3 }
 0x254   : > { %v1346_v5 = vadd.f32 %v1266_v55, %v1021_v47  ;;  %v1822_v37 = vpop.f32.mrf.mxu2  ;;  %v5340_v55 = vld [vmem:[#allocation14_spill] sm:$0xff] }
 0x255   : > { %3476 = vmatmul.msk.f32.gmra.mxu0 %vm512_vm2, %v4187_v43 }
 0x256   : > { %v1624_v4 = vadd.f32 %v4410_v56, %v1346_v5  ;;  %v1024_v56 = vadd.f32 %v4512_v9, %v5339_v23  ;;  %v4710_v12 = vpop.f32.mrf.mxu0  ;;  %v2493_v9 = vld [vmem:[#allocation2 + $0xa9] sm:$0xff]  ;;  %v5341_v5 = vld [vmem:[#allocation9_spill] sm:$0xff] }
 0x257   : > { %3497 = vmatmul.msk.f32.gmra.mxu1 %vm512_vm2, %v2492_v13  ;;  %v4726_v23 = vld [vmem:[#allocation2 + $0x142] sm:$0xff] }
 0x258   : > { %v4694_v30 = vadd.f32 %v1822_v37, %v1624_v4  ;;  %3333 = vmatmul.msk.f32.gmra.mxu3 %vm512_vm2, %v4692_v38  ;;  %v4721_v37 = vpop.f32.mrf.mxu1 }
 0x259   : > { %3405 = vmatmul.msk.f32.gmra.mxu2 %vm512_vm2, %v5338_v58 }
 0x25b   : > { %v1269_v0 = vpop.f32.mrf.mxu3 }
 0x25c   : > { %v1347_v43 = vadd.f32 %v1269_v0, %v1024_v56  ;;  %v1825_v36 = vpop.f32.mrf.mxu2  ;;  %v5342_v0 = vld [vmem:[#allocation16_spill] sm:$0xff] }
 0x25d   : > { %3477 = vmatmul.msk.f32.gmra.mxu0 %vm512_vm2, %v4223_v51 }
 0x25e   : > { %v1625_v22 = vadd.f32 %v4432_v18, %v1347_v43  ;;  %v1027_v18 = vadd.f32 %v4534_v46, %v5341_v5  ;;  %v2494_v46 = vld [vmem:[#allocation2 + $0xb1] sm:$0xff] }
 0x25f   : > { %3498 = vmatmul.msk.f32.gmra.mxu1 %vm512_vm2, %v2493_v9  ;;  %v5343_v43 = vld [vmem:[#allocation11_spill] sm:$0xff] }
 0x260   : > { %v4712_v47 = vadd.f32 %v1825_v36, %v1625_v22  ;;  %3334 = vmatmul.msk.f32.gmra.mxu3 %vm512_vm2, %v4708_v48  ;;  %v1030_v36 = vadd.f32 %v4559_v25, %v5343_v43  ;;  %v4739_v9 = vpop.f32.mrf.mxu1  ;;  %v5344_v25 = vld [vmem:[#allocation18_spill] sm:$0xff] }
 0x261   : > { %3406 = vmatmul.msk.f32.gmra.mxu2 %vm512_vm2, %v5340_v55 }
 0x263   : > { %v1272_v51 = vpop.f32.mrf.mxu3 }
 0x264   : > { %v1348_v4 = vadd.f32 %v1272_v51, %v1027_v18  ;;  %v1828_v58 = vpop.f32.mrf.mxu2  ;;  %v4744_v18 = vld [vmem:[#allocation2 + $0x152] sm:$0xff] }
 0x265   : > { %3478 = vmatmul.msk.f32.gmra.mxu0 %vm512_vm2, %v4244_v10 }
 0x266   : > { %v1626_v13 = vadd.f32 %v4450_v32, %v1348_v4  ;;  %v4737_v32 = vpop.f32.mrf.mxu0  ;;  %v2495_v4 = vld [vmem:[#allocation2 + $0xc1] sm:$0xff] }
 0x267   : > { %3499 = vmatmul.msk.f32.gmra.mxu1 %vm512_vm2, %v2494_v46 }
 0x268   : > { %v4728_v56 = vadd.f32 %v1828_v58, %v1626_v13  ;;  %3335 = vmatmul.msk.f32.gmra.mxu3 %vm512_vm2, %v4726_v23  ;;  %v5345_v58 = vld [vmem:[#allocation13_spill] sm:$0xff] }
 0x269   : > { %3407 = vmatmul.msk.f32.gmra.mxu2 %vm512_vm2, %v5342_v0  ;;  %v1033_v13 = vadd.f32 %v4577_v39, %v5345_v58  ;;  %v5346_v39 = vld [vmem:[#allocation20_spill] sm:$0xff]  ;;  %v4773_v58 = vld [vmem:[#allocation2 + $0x181] sm:$0xff] }
 0x26b   : > { %v1275_v22 = vpop.f32.mrf.mxu3 }
 0x26c   : > { %v1349_v10 = vadd.f32 %v1275_v22, %v1030_v36  ;;  %v1831_v55 = vpop.f32.mrf.mxu2  ;;  %v4760_v36 = vpop.f32.mrf.mxu1  ;;  %v4762_v22 = vld [vmem:[#allocation2 + $0x15a] sm:$0xff] }
 0x26d   : > { %3479 = vmatmul.msk.f32.gmra.mxu0 %vm512_vm2, %v4260_v41 }
 0x26e   : > { %v1627_v5 = vadd.f32 %v4475_v14, %v1349_v10  ;;  %v4755_v0 = vpop.f32.mrf.mxu0 }
 0x26f   : > { %3500 = vmatmul.msk.f32.gmra.mxu1 %vm512_vm2, %v2495_v4 }
 0x270   : > { %v4746_v51 = vadd.f32 %v1831_v55, %v1627_v5  ;;  %3336 = vmatmul.msk.f32.gmra.mxu3 %vm512_vm2, %v4744_v18  ;;  %v2496_v55 = vld [vmem:[#allocation2 + $0xc9] sm:$0xff] }
 0x271   : > { %3408 = vmatmul.msk.f32.gmra.mxu2 %vm512_vm2, %v5344_v25  ;;  %v5347_v5 = vld [vmem:[#allocation15_spill] sm:$0xff] }
 0x273   : > { %v1278_v14 = vpop.f32.mrf.mxu3 }
 0x274   : > { %v1350_v41 = vadd.f32 %v1278_v14, %v1033_v13  ;;  %v1834_v46 = vpop.f32.mrf.mxu2 }
 0x275   : > { %3480 = vmatmul.msk.f32.gmra.mxu0 %vm512_vm2, %v4498_v34 }
 0x276   : > { %v1628_v43 = vadd.f32 %v4500_v53, %v1350_v41  ;;  %v1036_v53 = vadd.f32 %v4595_v61, %v5347_v5  ;;  %v4775_v13 = vpop.f32.mrf.mxu0  ;;  %v4780_v41 = vld [vmem:[#allocation2 + $0x16a] sm:$0xff]  ;;  %v2497_v61 = vld [vmem:[#allocation2 + $0xd9] sm:$0xff] }
 0x277   : > { %3501 = vmatmul.msk.f32.gmra.mxu1 %vm512_vm2, %v2496_v55 }
 0x278   : > { %v4764_v10 = vadd.f32 %v1834_v46, %v1628_v43  ;;  %3337 = vmatmul.msk.f32.gmra.mxu3 %vm512_vm2, %v4762_v22  ;;  %v4788_v43 = vpop.f32.mrf.mxu1 }
 0x279   : > { %3409 = vmatmul.msk.f32.gmra.mxu2 %vm512_vm2, %v5346_v39  ;;  %v5348_v39 = vld [vmem:[#allocation17_spill] sm:$0xff] }
 0x27b   : > { %v1281_v25 = vpop.f32.mrf.mxu3 }
 0x27c   : > { %v1351_v34 = vadd.f32 %v1281_v25, %v1036_v53  ;;  %v1837_v4 = vpop.f32.mrf.mxu2  ;;  %v4793_v53 = vld [vmem:[#allocation2 + $0x189] sm:$0xff] }
 0x27d   : > { %3481 = vmatmul.msk.f32.gmra.mxu0 %vm512_vm2, %v4516_v40 }
 0x27e   : > { %v1629_v14 = vadd.f32 %v4524_v60, %v1351_v34  ;;  %v1039_v60 = vadd.f32 %v4621_v54, %v5348_v39  ;;  %v4796_v34 = vld [vmem:[#allocation2 + $0x172] sm:$0xff] }
 0x27f   : > { %3502 = vmatmul.msk.f32.gmra.mxu1 %vm512_vm2, %v2497_v61  ;;  %v5350_v54 = vld [vmem:[#allocation19_spill] sm:$0xff] }
 0x280   : > { %v4782_v46 = vadd.f32 %v1837_v4, %v1629_v14  ;;  %3338 = vmatmul.msk.f32.gmra.mxu3 %vm512_vm2, %v4780_v41  ;;  %v2498_v14 = vld [vmem:[#allocation2 + $0xe1] sm:$0xff]  ;;  %v1042_v61 = vadd.f32 %v4651_v52, %v5350_v54  ;;  %v4807_v39 = vpop.f32.mrf.mxu1 }
 0x281   : > { %3410 = vmatmul.msk.f32.gmra.mxu2 %vm512_vm2, %v4773_v58 }
 0x283   : > { %v1284_v55 = vpop.f32.mrf.mxu3 }
 0x284   : > { %v1352_v40 = vadd.f32 %v1284_v55, %v1039_v60  ;;  %v1840_v5 = vpop.f32.mrf.mxu2 }
 0x286   : > { %v1630_v25 = vadd.f32 %v4543_v50, %v1352_v40 }
 0x287   : > { %3503 = vmatmul.msk.f32.gmra.mxu1 %vm512_vm2, %v2498_v14 }
 0x288   : > { %v4798_v4 = vadd.f32 %v1840_v5, %v1630_v25  ;;  %3339 = vmatmul.msk.f32.gmra.mxu3 %vm512_vm2, %v4796_v34  ;;  %v2499_v25 = vld [vmem:[#allocation2 + $0xf1] sm:$0xff] }
 0x289   : > { %3411 = vmatmul.msk.f32.gmra.mxu2 %vm512_vm2, %v4793_v53 }
 0x28a   : > { %5349 = vst [vmem:[#allocation6_spill] sm:$0xff] %v4798_v4  ;;  %v4818_v4 = vpop.f32.mrf.mxu1 }
 0x28b   : > { %v1287_v60 = vpop.f32.mrf.mxu3 }
 0x28c   : > { %v1353_v50 = vadd.f32 %v1287_v60, %v1042_v61  ;;  %v1843_v55 = vpop.f32.mrf.mxu2  ;;  %v5352_v60 = vld [vmem:[#allocation25_spill] sm:$0xff] }
 0x28e   : > { %v1631_v40 = vadd.f32 %v4561_v7, %v1353_v50 }
 0x28f   : > { %3504 = vmatmul.msk.f32.gmra.mxu1 %vm512_vm2, %v2499_v25 }
 0x290   : > { %v4810_v5 = vadd.f32 %v1843_v55, %v1631_v40  ;;  %3416 = vmatmul.msk.f32.vlgmr.msra.gmra.mxu3 %vm512_vm2, %v4297_v6  ;;  %v2500_v6 = vld [vmem:[#allocation2 + $0xf9] sm:$0xff] }
 0x291   : > { %3524 = vmatmul.msk.f32.vlgmr.msra.gmra.mxu2 %vm512_vm2, %v4327_v45  ;;  %v5353_v55 = vld [vmem:[#allocation21_spill] sm:$0xff] }
 0x293   : > { %v1290_v14 = vpop.f32.mrf.mxu3 }
 0x294   : > { %v1354_v52 = vadd.f32 %v1290_v14, %v4280_v27  ;;  %v1846_v54 = vpop.f32.mrf.mxu2  ;;  %v4830_v14 = vpop.f32.mrf.mxu1 }
 0x296   : > { %v1632_v61 = vadd.f32 %v4582_v19, %v1354_v52  ;;  %v5355_v52 = vld [vmem:[#allocation27_spill] sm:$0xff] }
 0x297   : > { %3505 = vmatmul.msk.f32.gmra.mxu1 %vm512_vm2, %v2500_v6 }
 0x298   : > { %v4821_v7 = vadd.f32 %v1846_v54, %v1632_v61  ;;  %3417 = vmatmul.msk.f32.gmra.mxu3 %vm512_vm2, %v4311_v29  ;;  %v2501_v29 = vld [vmem:[#allocation2 + $0x109] sm:$0xff] }
 0x299   : > { %3525 = vmatmul.msk.f32.gmra.mxu2 %vm512_vm2, %v5352_v60  ;;  %v5356_v61 = vld [vmem:[#allocation22_spill] sm:$0xff] }
 0x29a   : > { %5351 = vst [vmem:[#allocation3_spill] sm:$0xff] %v4821_v7 }
 0x29b   : > { %v1293_v50 = vpop.f32.mrf.mxu3 }
 0x29c   : > { %v1355_v40 = vadd.f32 %v1293_v50, %v5353_v55  ;;  %v1849_v27 = vpop.f32.mrf.mxu2 }
 0x29e   : > { %v1633_v25 = vadd.f32 %v4611_v3, %v1355_v40  ;;  %v2502_v40 = vld [vmem:[#allocation2 + $0x111] sm:$0xff] }
 0x29f   : > { %3506 = vmatmul.msk.f32.gmra.mxu1 %vm512_vm2, %v2501_v29  ;;  %v5359_v29 = vld [vmem:[#allocation23_spill] sm:$0xff] }
 0x2a0   : > { %v4832_v19 = vadd.f32 %v1849_v27, %v1633_v25  ;;  %3418 = vmatmul.msk.f32.gmra.mxu3 %vm512_vm2, %v4327_v45  ;;  %v5358_v27 = vld [vmem:[#allocation29_spill] sm:$0xff]  ;;  %v4847_v45 = vpop.f32.mrf.mxu1 }
 0x2a1   : > { %3526 = vmatmul.msk.f32.gmra.mxu2 %vm512_vm2, %v5355_v52 }
 0x2a2   : > { %5354 = vst [vmem:[#allocation8_spill] sm:$0xff] %v4832_v19 }
 0x2a3   : > { %v1296_v54 = vpop.f32.mrf.mxu3 }
 0x2a4   : > { %v1356_v6 = vadd.f32 %v1296_v54, %v5356_v61  ;;  %v1852_v50 = vpop.f32.mrf.mxu2 }
 0x2a6   : > { %v1634_v55 = vadd.f32 %v4635_v42, %v1356_v6  ;;  %v5361_v6 = vld [vmem:[#allocation31_spill] sm:$0xff] }
 0x2a7   : > { %3507 = vmatmul.msk.f32.gmra.mxu1 %vm512_vm2, %v2502_v40  ;;  %v5362_v40 = vld [vmem:[#allocation24_spill] sm:$0xff] }
 0x2a8   : > { %v4841_v3 = vadd.f32 %v1852_v50, %v1634_v55  ;;  %3419 = vmatmul.msk.f32.gmra.mxu3 %vm512_vm2, %v5352_v60  ;;  %v2503_v60 = vld [vmem:[#allocation2 + $0x121] sm:$0xff]  ;;  %v4859_v50 = vpop.f32.mrf.mxu1 }
 0x2a9   : > { %3527 = vmatmul.msk.f32.gmra.mxu2 %vm512_vm2, %v5358_v27 }
 0x2aa   : > { %5357 = vst [vmem:[#allocation4_spill] sm:$0xff] %v4841_v3 }
 0x2ab   : > { %v1299_v25 = vpop.f32.mrf.mxu3 }
 0x2ac   : > { %v1357_v19 = vadd.f32 %v1299_v25, %v5359_v29  ;;  %v1855_v54 = vpop.f32.mrf.mxu2 }
 0x2ae   : > { %v1635_v61 = vadd.f32 %v4653_v59, %v1357_v19  ;;  %v2504_v19 = vld [vmem:[#allocation2 + $0x129] sm:$0xff] }
 0x2af   : > { %3508 = vmatmul.msk.f32.gmra.mxu1 %vm512_vm2, %v2503_v60 }
 0x2b0   : > { %v4852_v42 = vadd.f32 %v1855_v54, %v1635_v61  ;;  %3420 = vmatmul.msk.f32.gmra.mxu3 %vm512_vm2, %v5355_v52  ;;  %v5363_v52 = vld [vmem:[#allocation33_spill] sm:$0xff]  ;;  %v5364_v61 = vld [vmem:[#allocation26_spill] sm:$0xff]  ;;  %v4871_v7 = vpop.f32.mrf.mxu1 }
 0x2b1   : > { %3528 = vmatmul.msk.f32.gmra.mxu2 %vm512_vm2, %v5361_v6 }
 0x2b2   : > { %5360 = vst [vmem:[#allocation10_spill] sm:$0xff] %v4852_v42 }
 0x2b3   : > { %v1302_v55 = vpop.f32.mrf.mxu3 }
 0x2b4   : > { %v1358_v3 = vadd.f32 %v1302_v55, %v5362_v40  ;;  %v1858_v25 = vpop.f32.mrf.mxu2 }
 0x2b6   : > { %v1636_v29 = vadd.f32 %v4674_v24, %v1358_v3  ;;  %v2505_v3 = vld [vmem:[#allocation2 + $0x139] sm:$0xff] }
 0x2b7   : > { %3509 = vmatmul.msk.f32.gmra.mxu1 %vm512_vm2, %v2504_v19 }
 0x2b8   : > { %v4863_v59 = vadd.f32 %v1858_v25, %v1636_v29  ;;  %3421 = vmatmul.msk.f32.gmra.mxu3 %vm512_vm2, %v5358_v27  ;;  %v5366_v27 = vld [vmem:[#allocation35_spill] sm:$0xff]  ;;  %v5367_v25 = vld [vmem:[#allocation28_spill] sm:$0xff] }
 0x2b9   : > { %3529 = vmatmul.msk.f32.gmra.mxu2 %vm512_vm2, %v5363_v52 }
 0x2bb   : > { %v1305_v54 = vpop.f32.mrf.mxu3 }
 0x2bc   : > { %v1359_v60 = vadd.f32 %v1305_v54, %v5364_v61  ;;  %v1861_v42 = vpop.f32.mrf.mxu2  ;;  %v4883_v61 = vpop.f32.mrf.mxu1 }
 0x2be   : > { %v1637_v55 = vadd.f32 %v4700_v1, %v1359_v60 }
 0x2bf   : > { %3510 = vmatmul.msk.f32.gmra.mxu1 %vm512_vm2, %v2505_v3 }
 0x2c0   : > { %v4874_v24 = vadd.f32 %v1861_v42, %v1637_v55  ;;  %3422 = vmatmul.msk.f32.gmra.mxu3 %vm512_vm2, %v5361_v6  ;;  %v2506_v42 = vld [vmem:[#allocation2 + $0x141] sm:$0xff] }
 0x2c1   : > { %3530 = vmatmul.msk.f32.gmra.mxu2 %vm512_vm2, %v5366_v27  ;;  %v5369_v6 = vld [vmem:[#allocation37_spill] sm:$0xff]  ;;  %v5370_v55 = vld [vmem:[#allocation30_spill] sm:$0xff] }
 0x2c2   : > { %5365 = vst [vmem:[#allocation5_spill] sm:$0xff] %v4874_v24 }
 0x2c3   : > { %v1308_v40 = vpop.f32.mrf.mxu3 }
 0x2c4   : > { %v1360_v29 = vadd.f32 %v1308_v40, %v5367_v25  ;;  %v1864_v19 = vpop.f32.mrf.mxu2 }
 0x2c6   : > { %v1638_v54 = vadd.f32 %v4721_v37, %v1360_v29  ;;  %v2507_v29 = vld [vmem:[#allocation2 + $0x151] sm:$0xff] }
 0x2c7   : > { %3511 = vmatmul.msk.f32.gmra.mxu1 %vm512_vm2, %v2506_v42  ;;  %v5373_v42 = vld [vmem:[#allocation32_spill] sm:$0xff] }
 0x2c8   : > { %v4885_v1 = vadd.f32 %v1864_v19, %v1638_v54  ;;  %3423 = vmatmul.msk.f32.gmra.mxu3 %vm512_vm2, %v5363_v52  ;;  %v5372_v19 = vld [vmem:[#allocation39_spill] sm:$0xff]  ;;  %v4900_v52 = vpop.f32.mrf.mxu1 }
 0x2c9   : > { %3531 = vmatmul.msk.f32.gmra.mxu2 %vm512_vm2, %v5369_v6 }
 0x2ca   : > { %5368 = vst [vmem:[#allocation12_spill] sm:$0xff] %v4885_v1 }
 0x2cb   : > { %v1311_v60 = vpop.f32.mrf.mxu3 }
 0x2cc   : > { %v1361_v3 = vadd.f32 %v1311_v60, %v5370_v55  ;;  %v1867_v40 = vpop.f32.mrf.mxu2 }
 0x2ce   : > { %v1639_v25 = vadd.f32 %v4739_v9, %v1361_v3  ;;  %v5375_v3 = vld [vmem:[#allocation41_spill] sm:$0xff] }
 0x2cf   : > { %3512 = vmatmul.msk.f32.gmra.mxu1 %vm512_vm2, %v2507_v29  ;;  %v5376_v29 = vld [vmem:[#allocation34_spill] sm:$0xff] }
 0x2d0   : > { %v4894_v37 = vadd.f32 %v1867_v40, %v1639_v25  ;;  %3424 = vmatmul.msk.f32.gmra.mxu3 %vm512_vm2, %v5366_v27  ;;  %v2508_v27 = vld [vmem:[#allocation2 + $0x159] sm:$0xff]  ;;  %v4912_v40 = vpop.f32.mrf.mxu1 }
 0x2d1   : > { %3532 = vmatmul.msk.f32.gmra.mxu2 %vm512_vm2, %v5372_v19 }
 0x2d2   : > { %5371 = vst [vmem:[#allocation7_spill] sm:$0xff] %v4894_v37 }
 0x2d3   : > { %v1314_v54 = vpop.f32.mrf.mxu3 }
 0x2d4   : > { %v1362_v1 = vadd.f32 %v1314_v54, %v5373_v42  ;;  %v1870_v60 = vpop.f32.mrf.mxu2 }
 0x2d6   : > { %v1640_v55 = vadd.f32 %v4760_v36, %v1362_v1  ;;  %v2509_v1 = vld [vmem:[#allocation2 + $0x169] sm:$0xff] }
 0x2d7   : > { %3513 = vmatmul.msk.f32.gmra.mxu1 %vm512_vm2, %v2508_v27 }
 0x2d8   : > { %v4905_v9 = vadd.f32 %v1870_v60, %v1640_v55  ;;  %3425 = vmatmul.msk.f32.gmra.mxu3 %vm512_vm2, %v5369_v6  ;;  %v5377_v6 = vld [vmem:[#allocation43_spill] sm:$0xff]  ;;  %v5378_v55 = vld [vmem:[#allocation36_spill] sm:$0xff]  ;;  %v4924_v24 = vpop.f32.mrf.mxu1 }
 0x2d9   : > { %3533 = vmatmul.msk.f32.gmra.mxu2 %vm512_vm2, %v5375_v3 }
 0x2da   : > { %5374 = vst [vmem:[#allocation14_spill] sm:$0xff] %v4905_v9 }
 0x2db   : > { %v1317_v25 = vpop.f32.mrf.mxu3 }
 0x2dc   : > { %v1363_v37 = vadd.f32 %v1317_v25, %v5376_v29  ;;  %v1873_v54 = vpop.f32.mrf.mxu2 }
 0x2de   : > { %v1641_v42 = vadd.f32 %v4788_v43, %v1363_v37  ;;  %v2510_v37 = vld [vmem:[#allocation2 + $0x171] sm:$0xff] }
 0x2df   : > { %3514 = vmatmul.msk.f32.gmra.mxu1 %vm512_vm2, %v2509_v1 }
 0x2e0   : > { %v4916_v36 = vadd.f32 %v1873_v54, %v1641_v42  ;;  %3426 = vmatmul.msk.f32.gmra.mxu3 %vm512_vm2, %v5372_v19  ;;  %v5379_v19 = vld [vmem:[#allocation45_spill] sm:$0xff]  ;;  %v5380_v54 = vld [vmem:[#allocation38_spill] sm:$0xff] }
 0x2e1   : > { %3534 = vmatmul.msk.f32.gmra.mxu2 %vm512_vm2, %v5377_v6 }
 0x2e3   : > { %v1320_v60 = vpop.f32.mrf.mxu3 }
 0x2e4   : > { %v1364_v27 = vadd.f32 %v1320_v60, %v5378_v55  ;;  %v1876_v9 = vpop.f32.mrf.mxu2  ;;  %v4936_v55 = vpop.f32.mrf.mxu1 }
 0x2e6   : > { %v1642_v25 = vadd.f32 %v4807_v39, %v1364_v27  ;;  %v5382_v27 = vld [vmem:[#allocation40_spill] sm:$0xff] }
 0x2e7   : > { %3515 = vmatmul.msk.f32.gmra.mxu1 %vm512_vm2, %v2510_v37 }
 0x2e8   : > { %v4927_v43 = vadd.f32 %v1876_v9, %v1642_v25  ;;  %3427 = vmatmul.msk.f32.gmra.mxu3 %vm512_vm2, %v5375_v3  ;;  %v5381_v9 = vld [vmem:[#allocation47_spill] sm:$0xff] }
 0x2e9   : > { %3535 = vmatmul.msk.f32.gmra.mxu2 %vm512_vm2, %v5379_v19 }
 0x2eb   : > { %v1323_v29 = vpop.f32.mrf.mxu3 }
 0x2ec   : > { %v1365_v42 = vadd.f32 %v1323_v29, %v5380_v54  ;;  %v1879_v1 = vpop.f32.mrf.mxu2  ;;  %v5383_v54 = vld [vmem:[#allocation42_spill] sm:$0xff] }
 0x2ee   : > { %v1643_v60 = vadd.f32 %v4818_v4, %v1365_v42 }
 0x2ef   : > { %3516 = vmatmul.msk.f32.gmra.mxu1 %vm512_vm2, %v4773_v58 }
 0x2f0   : > { %v4938_v39 = vadd.f32 %v1879_v1, %v1643_v60  ;;  %3428 = vmatmul.msk.f32.gmra.mxu3 %vm512_vm2, %v5377_v6  ;;  %v4954_v6 = vpop.f32.mrf.mxu1 }
 0x2f1   : > { %3536 = vmatmul.msk.f32.gmra.mxu2 %vm512_vm2, %v5381_v9 }
 0x2f3   : > { %v1326_v3 = vpop.f32.mrf.mxu3 }
 0x2f4   : > { %v1366_v25 = vadd.f32 %v1326_v3, %v5382_v27  ;;  %v1882_v37 = vpop.f32.mrf.mxu2  ;;  %v5384_v3 = vld [vmem:[#allocation44_spill] sm:$0xff] }
 0x2f6   : > { %v1644_v29 = vadd.f32 %v4830_v14, %v1366_v25 }
 0x2f7   : > { %3517 = vmatmul.msk.f32.gmra.mxu1 %vm512_vm2, %v4793_v53 }
 0x2f8   : > { %v4948_v4 = vadd.f32 %v1882_v37, %v1644_v29  ;;  %3429 = vmatmul.msk.f32.gmra.mxu3 %vm512_vm2, %v5379_v19  ;;  %v5385_v29 = vld [vmem:[#allocation46_spill] sm:$0xff] }
 0x2f9   : > { %3537 = vmatmul.msk.f32.gmra.mxu2 %vm512_vm2, %v4548_v20 }
 0x2fb   : > { %v1329_v58 = vpop.f32.mrf.mxu3 }
 0x2fc   : > { %v1367_v42 = vadd.f32 %v1329_v58, %v5383_v54  ;;  %v1885_v1 = vpop.f32.mrf.mxu2 }
 0x2fe   : > { %v1645_v60 = vadd.f32 %v4847_v45, %v1367_v42 }
 0x300   : > { %v4960_v14 = vadd.f32 %v1885_v1, %v1645_v60  ;;  %3430 = vmatmul.msk.f32.gmra.mxu3 %vm512_vm2, %v5381_v9 }
 0x301   : > { %3538 = vmatmul.msk.f32.gmra.mxu2 %vm512_vm2, %v4566_v15 }
 0x303   : > { %v1332_v19 = vpop.f32.mrf.mxu3 }
 0x304   : > { %v1368_v27 = vadd.f32 %v1332_v19, %v5384_v3  ;;  %v1888_v25 = vpop.f32.mrf.mxu2  ;;  %v4985_v19 = vpop.f32.mrf.mxu1 }
 0x306   : > { %v1646_v53 = vadd.f32 %v4859_v50, %v1368_v27 }
 0x308   : > { %v4968_v37 = vadd.f32 %v1888_v25, %v1646_v53  ;;  %3431 = vmatmul.msk.f32.gmra.mxu3 %vm512_vm2, %v4548_v20  ;;  %v4982_v20 = vpop.f32.mrf.mxu0 }
 0x309   : > { %3539 = vmatmul.msk.f32.gmra.mxu2 %vm512_vm2, %v4584_v17 }
 0x30b   : > { %v1335_v45 = vpop.f32.mrf.mxu3 }
 0x30c   : > { %v1369_v9 = vadd.f32 %v1335_v45, %v5385_v29  ;;  %v1891_v58 = vpop.f32.mrf.mxu2  ;;  %v5010_v29 = vpop.f32.mrf.mxu1 }
 0x30e   : > { %v1647_v54 = vadd.f32 %v4871_v7, %v1369_v9 }
 0x310   : > { %v4976_v42 = vadd.f32 %v1891_v58, %v1647_v54  ;;  %3432 = vmatmul.msk.f32.gmra.mxu3 %vm512_vm2, %v4566_v15  ;;  %v4992_v15 = vld [vmem:[%s5253_s4] ss:$0 sm:$0xff] }
 0x311   : > { %3540 = vmatmul.msk.f32.gmra.mxu2 %vm512_vm2, %v4600_v2 }
 0x313   : > { %v2076_v50 = vpop.f32.mrf.mxu3 }
 0x314   : > { %v2172_v1 = vadd.f32 %v2076_v50, %v4550_v31  ;;  %v2911_v60 = vpop.f32.mrf.mxu2 }
 0x316   : > { %v2451_v3 = vadd.f32 %v4669_v62, %v2172_v1 }
 0x318   : > { %v2729_v7 = vadd.f32 %v4883_v61, %v2451_v3  ;;  %3433 = vmatmul.msk.f32.gmra.mxu3 %vm512_vm2, %v4584_v17  ;;  %v5007_v61 = vpop.f32.mrf.mxu0 }
 0x319   : > { %3541 = vmatmul.msk.f32.gmra.mxu2 %vm512_vm2, %v4619_v63 }
 0x31a   : > { %v3007_v27 = vadd.f32 %v2911_v60, %v2729_v7 }
 0x31b   : > { %v2079_v31 = vpop.f32.mrf.mxu3 }
 0x31c   : > { %v3043_v25 = vadd.f32 %v4992_v15, %v3007_v27  ;;  %v2173_v53 = vadd.f32 %v2079_v31, %v4568_v26  ;;  %v2914_v62 = vpop.f32.mrf.mxu2 }
 0x31e   : > { %v3075_v17 = vmax.f32 %v3043_v25, 0.0  ;;  %v2452_v45 = vadd.f32 %v4687_v49, %v2173_v53 }
 0x320   : > { %3107 = vst.msk [vmem:[%s5005_s23] sm:$0xff] %vm512_vm2, %v3075_v17  ;;  %v2730_v26 = vadd.f32 %v4900_v52, %v2452_v45  ;;  %3434 = vmatmul.msk.f32.gmra.mxu3 %vm512_vm2, %v4600_v2  ;;  %v5022_v3 = vpop.f32.mrf.mxu0  ;;  %v5031_v52 = vpop.f32.mrf.mxu1 }
 0x321   : > { %3542 = vmatmul.msk.f32.gmra.mxu2 %vm512_vm2, %v4640_v11 }
 0x322   : > { %v3008_v9 = vadd.f32 %v2914_v62, %v2730_v26 }
 0x323   : > { %v2082_v58 = vpop.f32.mrf.mxu3 }
 0x324   : > { %v3044_v54 = vadd.f32 %v4992_v15, %v3008_v9  ;;  %v2174_v50 = vadd.f32 %v2082_v58, %v4586_v35  ;;  %v2917_v1 = vpop.f32.mrf.mxu2 }
 0x326   : > { %v3076_v49 = vmax.f32 %v3044_v54, 0.0  ;;  %v2453_v60 = vadd.f32 %v4710_v12, %v2174_v50 }
 0x328   : > { %3108 = vst.msk [vmem:[%s5005_s23 + $0x8] sm:$0xff] %vm512_vm2, %v3076_v49  ;;  %v2731_v2 = vadd.f32 %v4912_v40, %v2453_v60  ;;  %3435 = vmatmul.msk.f32.gmra.mxu3 %vm512_vm2, %v4619_v63  ;;  %v5043_v40 = vpop.f32.mrf.mxu0  ;;  %v5045_v17 = vpop.f32.mrf.mxu1 }
 0x329   : > { %3543 = vmatmul.msk.f32.gmra.mxu2 %vm512_vm2, %v4658_v28 }
 0x32a   : > { %v3009_v35 = vadd.f32 %v2917_v1, %v2731_v2 }
 0x32b   : > { %v2085_v7 = vpop.f32.mrf.mxu3 }
 0x32c   : > { %v3045_v27 = vadd.f32 %v4992_v15, %v3009_v35  ;;  %v2175_v12 = vadd.f32 %v2085_v7, %v4602_v21  ;;  %v2920_v31 = vpop.f32.mrf.mxu2 }
 0x32e   : > { %v3077_v25 = vmax.f32 %v3045_v27, 0.0  ;;  %v2454_v53 = vadd.f32 %v4737_v32, %v2175_v12 }
 0x330   : > { %3109 = vst.msk [vmem:[%s5005_s23 + $0x10] sm:$0xff] %vm512_vm2, %v3077_v25  ;;  %v2732_v63 = vadd.f32 %v4924_v24, %v2454_v53  ;;  %3436 = vmatmul.msk.f32.gmra.mxu3 %vm512_vm2, %v4640_v11  ;;  %v5057_v50 = vpop.f32.mrf.mxu0 }
 0x331   : > { %3544 = vmatmul.msk.f32.gmra.mxu2 %vm512_vm2, %v4676_v44 }
 0x332   : > { %v3010_v62 = vadd.f32 %v2920_v31, %v2732_v63 }
 0x333   : > { %v2088_v21 = vpop.f32.mrf.mxu3 }
 0x334   : > { %v3046_v45 = vadd.f32 %v4992_v15, %v3010_v62  ;;  %v2176_v32 = vadd.f32 %v2088_v21, %v4623_v16  ;;  %v2923_v26 = vpop.f32.mrf.mxu2 }
 0x336   : > { %v3078_v9 = vmax.f32 %v3046_v45, 0.0  ;;  %v2455_v24 = vadd.f32 %v4755_v0, %v2176_v32  ;;  %v5061_v0 = vpop.f32.mrf.mxu1 }
 0x338   : > { %3110 = vst.msk [vmem:[%s5005_s23 + $0x18] sm:$0xff] %vm512_vm2, %v3078_v9  ;;  %v2733_v11 = vadd.f32 %v4936_v55, %v2455_v24  ;;  %3437 = vmatmul.msk.f32.gmra.mxu3 %vm512_vm2, %v4658_v28  ;;  %v5073_v12 = vpop.f32.mrf.mxu0 }
 0x339   : > { %3545 = vmatmul.msk.f32.gmra.mxu2 %vm512_vm2, %v4692_v38 }
 0x33a   : > { %v3011_v58 = vadd.f32 %v2923_v26, %v2733_v11 }
 0x33b   : > { %v2091_v54 = vpop.f32.mrf.mxu3 }
 0x33c   : > { %v3047_v16 = vadd.f32 %v4992_v15, %v3011_v58  ;;  %v2177_v1 = vadd.f32 %v2091_v54, %v4642_v57  ;;  %v2926_v49 = vpop.f32.mrf.mxu2 }
 0x33e   : > { %v3079_v60 = vmax.f32 %v3047_v16, 0.0  ;;  %v2456_v55 = vadd.f32 %v4775_v13, %v2177_v1 }
 0x340   : > { %3111 = vst.msk [vmem:[%s5005_s23 + $0x20] sm:$0xff] %vm512_vm2, %v3079_v60  ;;  %v2734_v28 = vadd.f32 %v4954_v6, %v2456_v55  ;;  %3438 = vmatmul.msk.f32.gmra.mxu3 %vm512_vm2, %v4676_v44  ;;  %v5076_v6 = vpop.f32.mrf.mxu1  ;;  %v5088_v45 = vpop.f32.mrf.mxu0 }
 0x341   : > { %3546 = vmatmul.msk.f32.gmra.mxu2 %vm512_vm2, %v4708_v48 }
 0x342   : > { %v3012_v2 = vadd.f32 %v2926_v49, %v2734_v28 }
 0x343   : > { %v2094_v35 = vpop.f32.mrf.mxu3 }
 0x344   : > { %v3048_v57 = vadd.f32 %v4992_v15, %v3012_v2  ;;  %v2178_v7 = vadd.f32 %v2094_v35, %v4660_v33  ;;  %v2929_v27 = vpop.f32.mrf.mxu2 }
 0x346   : > { %v3080_v13 = vmax.f32 %v3048_v57, 0.0  ;;  %v2457_v31 = vadd.f32 %v4982_v20, %v2178_v7  ;;  %v2235_v7 = vld [vmem:[#allocation2 + $0x198] sm:$0xff] }
 0x347   : > { %3482 = vmatmul.msk.f32.gmra.mxu0 %vm512_vm2, %v2235_v7 }
 0x348   : > { %3112 = vst.msk [vmem:[%s5005_s23 + $0x28] sm:$0xff] %vm512_vm2, %v3080_v13  ;;  %v2735_v44 = vadd.f32 %v4985_v19, %v2457_v31  ;;  %3439 = vmatmul.msk.f32.gmra.mxu3 %vm512_vm2, %v4692_v38  ;;  %v5097_v19 = vpop.f32.mrf.mxu1  ;;  %v2513_v13 = vld [vmem:[#allocation2 + $0x199] sm:$0xff] }
 0x349   : > { %3547 = vmatmul.msk.f32.gmra.mxu2 %vm512_vm2, %v4726_v23  ;;  %3518 = vmatmul.msk.f32.gmra.mxu1 %vm512_vm2, %v2513_v13 }
 0x34a   : > { %v3013_v33 = vadd.f32 %v2929_v27, %v2735_v44 }
 0x34b   : > { %v2097_v25 = vpop.f32.mrf.mxu3 }
 0x34c   : > { %v3049_v53 = vadd.f32 %v4992_v15, %v3013_v33  ;;  %v2179_v63 = vadd.f32 %v2097_v25, %v4678_v8  ;;  %v2932_v62 = vpop.f32.mrf.mxu2 }
 0x34e   : > { %v3081_v20 = vmax.f32 %v3049_v53, 0.0  ;;  %v2458_v21 = vadd.f32 %v5007_v61, %v2179_v63  ;;  %v2789_v53 = vld [vmem:[#allocation2 + $0x182] sm:$0xff] }
 0x350   : > { %3113 = vst.msk [vmem:[%s5005_s23 + $0x30] sm:$0xff] %vm512_vm2, %v3081_v20  ;;  %v2736_v38 = vadd.f32 %v5010_v29, %v2458_v21  ;;  %3440 = vmatmul.msk.f32.gmra.mxu3 %vm512_vm2, %v4708_v48  ;;  %v5109_v29 = vpop.f32.mrf.mxu0  ;;  %v5111_v54 = vpop.f32.mrf.mxu1  ;;  %v2514_v21 = vld [vmem:[#allocation2 + $0x1a1] sm:$0xff] }
 0x351   : > { %3548 = vmatmul.msk.f32.gmra.mxu2 %vm512_vm2, %v4744_v18  ;;  %3519 = vmatmul.msk.f32.gmra.mxu1 %vm512_vm2, %v2514_v21 }
 0x352   : > { %v3014_v8 = vadd.f32 %v2932_v62, %v2736_v38 }
 0x353   : > { %v2100_v32 = vpop.f32.mrf.mxu3 }
 0x354   : > { %v3050_v26 = vadd.f32 %v4992_v15, %v3014_v8  ;;  %v2180_v61 = vadd.f32 %v2100_v32, %v4694_v30  ;;  %v2935_v9 = vpop.f32.mrf.mxu2 }
 0x356   : > { %v3082_v24 = vmax.f32 %v3050_v26, 0.0  ;;  %v2459_v11 = vadd.f32 %v5022_v3, %v2180_v61 }
 0x358   : > { %3114 = vst.msk [vmem:[%s5005_s23 + $0x38] sm:$0xff] %vm512_vm2, %v3082_v24  ;;  %v2737_v48 = vadd.f32 %v5031_v52, %v2459_v11  ;;  %3441 = vmatmul.msk.f32.gmra.mxu3 %vm512_vm2, %v4726_v23  ;;  %v5123_v28 = vpop.f32.mrf.mxu0 }
 0x359   : > { %3549 = vmatmul.msk.f32.gmra.mxu2 %vm512_vm2, %v4762_v22 }
 0x35a   : > { %v3015_v58 = vadd.f32 %v2935_v9, %v2737_v48 }
 0x35b   : > { %v2103_v30 = vpop.f32.mrf.mxu3 }
 0x35c   : > { %v3051_v16 = vadd.f32 %v4992_v15, %v3015_v58  ;;  %v2181_v3 = vadd.f32 %v2103_v30, %v4712_v47  ;;  %v2938_v1 = vpop.f32.mrf.mxu2  ;;  %v2791_v58 = vld [vmem:[#allocation2 + $0x19a] sm:$0xff] }
 0x35e   : > { %v3083_v49 = vmax.f32 %v3051_v16, 0.0  ;;  %v2460_v52 = vadd.f32 %v5043_v40, %v2181_v3  ;;  %v5127_v40 = vpop.f32.mrf.mxu1 }
 0x360   : > { %3115 = vst.msk [vmem:[%s5005_s23 + $0x40] sm:$0xff] %vm512_vm2, %v3083_v49  ;;  %v2738_v23 = vadd.f32 %v5045_v17, %v2460_v52  ;;  %3442 = vmatmul.msk.f32.gmra.mxu3 %vm512_vm2, %v4744_v18  ;;  %v5386_v52 = vld [vmem:[#allocation6_spill] sm:$0xff] }
 0x361   : > { %3550 = vmatmul.msk.f32.gmra.mxu2 %vm512_vm2, %v4780_v41 }
 0x362   : > { %v3016_v60 = vadd.f32 %v2938_v1, %v2738_v23 }
 0x363   : > { %v2106_v55 = vpop.f32.mrf.mxu3 }
 0x364   : > { %v3052_v47 = vadd.f32 %v4992_v15, %v3016_v60  ;;  %v2182_v2 = vadd.f32 %v2106_v55, %v4728_v56  ;;  %v2941_v35 = vpop.f32.mrf.mxu2  ;;  %v2792_v55 = vld [vmem:[#allocation2 + $0x1a2] sm:$0xff] }
 0x366   : > { %v3084_v57 = vmax.f32 %v3052_v47, 0.0  ;;  %v2461_v17 = vadd.f32 %v5057_v50, %v2182_v2  ;;  %v2678_v25 = vpop.f32.mrf.mxu1 }
 0x368   : > { %3116 = vst.msk [vmem:[%s5005_s23 + $0x48] sm:$0xff] %vm512_vm2, %v3084_v57  ;;  %v2739_v18 = vadd.f32 %v5061_v0, %v2461_v17  ;;  %3443 = vmatmul.msk.f32.gmra.mxu3 %vm512_vm2, %v4762_v22  ;;  %v2400_v0 = vpop.f32.mrf.mxu0 }
 0x369   : > { %3551 = vmatmul.msk.f32.gmra.mxu2 %vm512_vm2, %v4796_v34 }
 0x36a   : > { %v3017_v27 = vadd.f32 %v2941_v35, %v2739_v18 }
 0x36b   : > { %v2109_v56 = vpop.f32.mrf.mxu3 }
 0x36c   : > { %v3053_v31 = vadd.f32 %v4992_v15, %v3017_v27  ;;  %v2183_v50 = vadd.f32 %v2109_v56, %v4746_v51  ;;  %v2944_v44 = vpop.f32.mrf.mxu2  ;;  %v2236_v51 = vld [vmem:[#allocation2 + $0x1a0] sm:$0xff] }
 0x36d   : > { %3483 = vmatmul.msk.f32.gmra.mxu0 %vm512_vm2, %v2236_v51 }
 0x36e   : > { %v3085_v33 = vmax.f32 %v3053_v31, 0.0  ;;  %v2462_v22 = vadd.f32 %v5073_v12, %v2183_v50  ;;  %v2681_v9 = vpop.f32.mrf.mxu1 }
 0x370   : > { %3117 = vst.msk [vmem:[%s5005_s23 + $0x50] sm:$0xff] %vm512_vm2, %v3085_v33  ;;  %v2740_v63 = vadd.f32 %v5076_v6, %v2462_v22  ;;  %3444 = vmatmul.msk.f32.gmra.mxu3 %vm512_vm2, %v4780_v41  ;;  %v2790_v41 = vld [vmem:[#allocation2 + $0x18a] sm:$0xff]  ;;  %v2403_v26 = vpop.f32.mrf.mxu0 }
 0x371   : > { %3552 = vmatmul.msk.f32.gmra.mxu2 %vm512_vm2, %v2789_v53 }
 0x372   : > { %v3018_v62 = vadd.f32 %v2944_v44, %v2740_v63  ;;  %v5387_v44 = vld [vmem:[#allocation3_spill] sm:$0xff] }
 0x373   : > { %v2112_v20 = vpop.f32.mrf.mxu3 }
 0x374   : > { %v3054_v12 = vadd.f32 %v4992_v15, %v3018_v62  ;;  %v2184_v38 = vadd.f32 %v2112_v20, %v4764_v10  ;;  %v2947_v8 = vpop.f32.mrf.mxu2 }
 0x376   : > { %v3086_v6 = vmax.f32 %v3054_v12, 0.0  ;;  %v2463_v32 = vadd.f32 %v5088_v45, %v2184_v38  ;;  %v2684_v1 = vpop.f32.mrf.mxu1 }
 0x378   : > { %3118 = vst.msk [vmem:[%s5005_s23 + $0x58] sm:$0xff] %vm512_vm2, %v3086_v6  ;;  %v2741_v61 = vadd.f32 %v5097_v19, %v2463_v32  ;;  %3445 = vmatmul.msk.f32.gmra.mxu3 %vm512_vm2, %v4796_v34  ;;  %v2406_v34 = vpop.f32.mrf.mxu0 }
 0x379   : > { %3553 = vmatmul.msk.f32.gmra.mxu2 %vm512_vm2, %v2790_v41 }
 0x37a   : > { %v3019_v10 = vadd.f32 %v2947_v8, %v2741_v61 }
 0x37b   : > { %v2115_v24 = vpop.f32.mrf.mxu3 }
 0x37c   : > { %v3055_v11 = vadd.f32 %v4992_v15, %v3019_v10  ;;  %v2185_v48 = vadd.f32 %v2115_v24, %v4782_v46  ;;  %v2950_v45 = vpop.f32.mrf.mxu2 }
 0x37e   : > { %v3087_v30 = vmax.f32 %v3055_v11, 0.0  ;;  %v2464_v16 = vadd.f32 %v5109_v29, %v2185_v48  ;;  %v2687_v27 = vpop.f32.mrf.mxu1 }
 0x380   : > { %3119 = vst.msk [vmem:[%s5005_s23 + $0x60] sm:$0xff] %vm512_vm2, %v3087_v30  ;;  %v2742_v19 = vadd.f32 %v5111_v54, %v2464_v16  ;;  %3446 = vmatmul.msk.f32.gmra.mxu3 %vm512_vm2, %v2789_v53  ;;  %v2409_v57 = vpop.f32.mrf.mxu0 }
 0x381   : > { %3554 = vmatmul.msk.f32.gmra.mxu2 %vm512_vm2, %v2791_v58 }
 0x382   : > { %v3020_v3 = vadd.f32 %v2950_v45, %v2742_v19 }
 0x383   : > { %v2118_v49 = vpop.f32.mrf.mxu3 }
 0x384   : > { %v3056_v46 = vadd.f32 %v4992_v15, %v3020_v3  ;;  %v2186_v23 = vadd.f32 %v2118_v49, %v5386_v52  ;;  %v2953_v60 = vpop.f32.mrf.mxu2  ;;  %v5390_v49 = vld [vmem:[#allocation10_spill] sm:$0xff] }
 0x386   : > { %v3088_v29 = vmax.f32 %v3056_v46, 0.0  ;;  %v2465_v47 = vadd.f32 %v5123_v28, %v2186_v23 }
 0x388   : > { %3120 = vst.msk [vmem:[%s5005_s23 + $0x68] sm:$0xff] %vm512_vm2, %v3088_v29  ;;  %v2743_v54 = vadd.f32 %v5127_v40, %v2465_v47  ;;  %3447 = vmatmul.msk.f32.gmra.mxu3 %vm512_vm2, %v2790_v41  ;;  %v2412_v53 = vpop.f32.mrf.mxu0 }
 0x389   : > { %3555 = vmatmul.msk.f32.gmra.mxu2 %vm512_vm2, %v2792_v55 }
 0x38a   : > { %v3021_v2 = vadd.f32 %v2953_v60, %v2743_v54 }
 0x38b   : > { %v2121_v35 = vpop.f32.mrf.mxu3 }
 0x38c   : > { %v3057_v17 = vadd.f32 %v4992_v15, %v3021_v2  ;;  %v2187_v18 = vadd.f32 %v2121_v35, %v4810_v5  ;;  %v2956_v7 = vpop.f32.mrf.mxu2  ;;  %v2690_v5 = vpop.f32.mrf.mxu1 }
 0x38e   : > { %v3089_v56 = vmax.f32 %v3057_v17, 0.0  ;;  %v2466_v28 = vadd.f32 %v2400_v0, %v2187_v18 }
 0x390   : > { %3121 = vst.msk [vmem:[%s5005_s23 + $0x70] sm:$0xff] %vm512_vm2, %v3089_v56  ;;  %v2744_v13 = vadd.f32 %v2678_v25, %v2466_v28  ;;  %v5388_v25 = vld [vmem:[#allocation8_spill] sm:$0xff]  ;;  %v2415_v32 = vpop.f32.mrf.mxu0 }
 0x392   : > { %v3022_v40 = vadd.f32 %v2956_v7, %v2744_v13 }
 0x393   : > { %v2124_v31 = vpop.f32.mrf.mxu3 }
 0x394   : > { %v3058_v50 = vadd.f32 %v4992_v15, %v3022_v40  ;;  %v2188_v33 = vadd.f32 %v2124_v31, %v5387_v44  ;;  %v2959_v22 = vpop.f32.mrf.mxu2  ;;  %v2693_v61 = vpop.f32.mrf.mxu1  ;;  %v5391_v40 = vld [vmem:[#allocation5_spill] sm:$0xff] }
 0x396   : > { %v3090_v63 = vmax.f32 %v3058_v50, 0.0  ;;  %v2467_v51 = vadd.f32 %v2403_v26, %v2188_v33 }
 0x398   : > { %3122 = vst.msk [vmem:[%s5005_s23 + $0x78] sm:$0xff] %vm512_vm2, %v3090_v63  ;;  %v2745_v62 = vadd.f32 %v2681_v9, %v2467_v51  ;;  %v5389_v9 = vld [vmem:[#allocation4_spill] sm:$0xff]  ;;  %v2418_v16 = vpop.f32.mrf.mxu0 }
 0x39a   : > { %v3023_v20 = vadd.f32 %v2959_v22, %v2745_v62  ;;  %v5392_v62 = vld [vmem:[#allocation12_spill] sm:$0xff] }
 0x39b   : > { %v2127_v0 = vpop.f32.mrf.mxu3 }
 0x39c   : > { %v3059_v21 = vadd.f32 %v4992_v15, %v3023_v20  ;;  %v2189_v12 = vadd.f32 %v2127_v0, %v5388_v25  ;;  %v2962_v38 = vpop.f32.mrf.mxu2 }
 0x39e   : > { %v3091_v8 = vmax.f32 %v3059_v21, 0.0  ;;  %v2468_v6 = vadd.f32 %v2406_v34, %v2189_v12  ;;  %v2696_v34 = vpop.f32.mrf.mxu1 }
 0x3a0   : > { %3123 = vst.msk [vmem:[%s5005_s23 + $0x80] sm:$0xff] %vm512_vm2, %v3091_v8  ;;  %v2746_v41 = vadd.f32 %v2684_v1, %v2468_v6  ;;  %v2421_v54 = vpop.f32.mrf.mxu0 }
 0x3a2   : > { %v3024_v26 = vadd.f32 %v2962_v38, %v2746_v41 }
 0x3a3   : > { %v2130_v10 = vpop.f32.mrf.mxu3 }
 0x3a4   : > { %v3060_v24 = vadd.f32 %v4992_v15, %v3024_v26  ;;  %v2190_v11 = vadd.f32 %v2130_v10, %v5389_v9  ;;  %v2965_v48 = vpop.f32.mrf.mxu2 }
 0x3a6   : > { %v3092_v45 = vmax.f32 %v3060_v24, 0.0  ;;  %v2469_v58 = vadd.f32 %v2409_v57, %v2190_v11  ;;  %v2699_v17 = vpop.f32.mrf.mxu1 }
 0x3a8   : > { %3124 = vst.msk [vmem:[%s5005_s23 + $0x88] sm:$0xff] %vm512_vm2, %v3092_v45  ;;  %v2747_v30 = vadd.f32 %v2687_v27, %v2469_v58  ;;  %v2424_v44 = vpop.f32.mrf.mxu0 }
 0x3aa   : > { %v3025_v19 = vadd.f32 %v2965_v48, %v2747_v30 }
 0x3ab   : > { %v2133_v3 = vpop.f32.mrf.mxu3 }
 0x3ac   : > { %v3061_v1 = vadd.f32 %v4992_v15, %v3025_v19  ;;  %v2191_v46 = vadd.f32 %v2133_v3, %v5390_v49  ;;  %v2968_v52 = vpop.f32.mrf.mxu2  ;;  %v5394_v19 = vld [vmem:[#allocation14_spill] sm:$0xff] }
 0x3ae   : > { %v3093_v23 = vmax.f32 %v3061_v1, 0.0  ;;  %v2470_v60 = vadd.f32 %v2412_v53, %v2191_v46 }
 0x3b0   : > { %3125 = vst.msk [vmem:[%s5005_s23 + $0x90] sm:$0xff] %vm512_vm2, %v3093_v23  ;;  %v2748_v55 = vadd.f32 %v2690_v5, %v2470_v60  ;;  %v2427_v12 = vpop.f32.mrf.mxu0 }
 0x3b2   : > { %v3026_v29 = vadd.f32 %v2968_v52, %v2748_v55 }
 0x3b3   : > { %v2136_v47 = vpop.f32.mrf.mxu3 }
 0x3b4   : > { %v3062_v2 = vadd.f32 %v4992_v15, %v3026_v29  ;;  %v2192_v35 = vadd.f32 %v2136_v47, %v4863_v59  ;;  %v2971_v57 = vpop.f32.mrf.mxu2  ;;  %v2702_v59 = vpop.f32.mrf.mxu1 }
 0x3b6   : > { %v3094_v18 = vmax.f32 %v3062_v2, 0.0  ;;  %v2471_v7 = vadd.f32 %v2415_v32, %v2192_v35 }
 0x3b8   : > { %3126 = vst.msk [vmem:[%s5005_s23 + $0x98] sm:$0xff] %vm512_vm2, %v3094_v18  ;;  %v2749_v27 = vadd.f32 %v2693_v61, %v2471_v7  ;;  %v5393_v61 = vld [vmem:[#allocation7_spill] sm:$0xff]  ;;  %v2430_v48 = vpop.f32.mrf.mxu0 }
 0x3ba   : > { %v3027_v56 = vadd.f32 %v2971_v57, %v2749_v27 }
 0x3bb   : > { %v2139_v28 = vpop.f32.mrf.mxu3 }
 0x3bc   : > { %v3063_v13 = vadd.f32 %v4992_v15, %v3027_v56  ;;  %v2193_v31 = vadd.f32 %v2139_v28, %v5391_v40  ;;  %v2974_v50 = vpop.f32.mrf.mxu2  ;;  %v2705_v8 = vpop.f32.mrf.mxu1 }
 0x3be   : > { %v3095_v33 = vmax.f32 %v3063_v13, 0.0  ;;  %v2472_v22 = vadd.f32 %v2418_v16, %v2193_v31 }
 0x3c0   : > { %3127 = vst.msk [vmem:[%s5005_s23 + $0xa0] sm:$0xff] %vm512_vm2, %v3095_v33  ;;  %v2750_v53 = vadd.f32 %v2696_v34, %v2472_v22  ;;  %v2433_v47 = vpop.f32.mrf.mxu0 }
 0x3c2   : > { %v3028_v63 = vadd.f32 %v2974_v50, %v2750_v53 }
 0x3c3   : > { %v2142_v51 = vpop.f32.mrf.mxu3 }
 0x3c4   : > { %v3064_v5 = vadd.f32 %v4992_v15, %v3028_v63  ;;  %v2194_v20 = vadd.f32 %v2142_v51, %v5392_v62  ;;  %v2977_v0 = vpop.f32.mrf.mxu2  ;;  %v2708_v58 = vpop.f32.mrf.mxu1 }
 0x3c6   : > { %v3096_v21 = vmax.f32 %v3064_v5, 0.0  ;;  %v2473_v25 = vadd.f32 %v2421_v54, %v2194_v20 }
 0x3c8   : > { %3128 = vst.msk [vmem:[%s5005_s23 + $0xa8] sm:$0xff] %vm512_vm2, %v3096_v21  ;;  %v2751_v38 = vadd.f32 %v2699_v17, %v2473_v25 }
 0x3ca   : > { %v3029_v6 = vadd.f32 %v2977_v0, %v2751_v38 }
 0x3cb   : > { %v2145_v32 = vpop.f32.mrf.mxu3 }
 0x3cc   : > { %v3065_v41 = vadd.f32 %v4992_v15, %v3029_v6  ;;  %v2195_v26 = vadd.f32 %v2145_v32, %v5393_v61  ;;  %v2980_v10 = vpop.f32.mrf.mxu2  ;;  %v2711_v54 = vpop.f32.mrf.mxu1 }
 0x3ce   : > { %v3097_v24 = vmax.f32 %v3065_v41, 0.0  ;;  %v2474_v9 = vadd.f32 %v2424_v44, %v2195_v26 }
 0x3d0   : > { %3129 = vst.msk [vmem:[%s5005_s23 + $0xb0] sm:$0xff] %vm512_vm2, %v3097_v24  ;;  %v2752_v11 = vadd.f32 %v2702_v59, %v2474_v9 }
 0x3d2   : > { %v3030_v45 = vadd.f32 %v2980_v10, %v2752_v11 }
 0x3d3   : > { %v2148_v30 = vpop.f32.mrf.mxu3 }
 0x3d4   : > { %v3066_v16 = vadd.f32 %v4992_v15, %v3030_v45  ;;  %v2196_v34 = vadd.f32 %v2148_v30, %v5394_v19  ;;  %v2983_v3 = vpop.f32.mrf.mxu2  ;;  %v2714_v40 = vpop.f32.mrf.mxu1 }
 0x3d6   : > { %v3098_v1 = vmax.f32 %v3066_v16, 0.0  ;;  %v2475_v49 = vadd.f32 %v2427_v12, %v2196_v34 }
 0x3d8   : > { %3130 = vst.msk [vmem:[%s5005_s23 + $0xb8] sm:$0xff] %vm512_vm2, %v3098_v1  ;;  %v2753_v46 = vadd.f32 %v2705_v8, %v2475_v49 }
 0x3da   : > { %v3031_v52 = vadd.f32 %v2983_v3, %v2753_v46 }
 0x3db   : > { %v2151_v23 = vpop.f32.mrf.mxu3 }
 0x3dc   : > { %v3067_v60 = vadd.f32 %v4992_v15, %v3031_v52  ;;  %v2197_v55 = vadd.f32 %v2151_v23, %v4916_v36  ;;  %v2986_v29 = vpop.f32.mrf.mxu2  ;;  %v2436_v36 = vpop.f32.mrf.mxu0 }
 0x3dd   : > { %v2717_v5 = vpop.f32.mrf.mxu1 }
 0x3de   : > { %v3099_v2 = vmax.f32 %v3067_v60, 0.0  ;;  %v2476_v35 = vadd.f32 %v2430_v48, %v2197_v55 }
 0x3e0   : > { %3131 = vst.msk [vmem:[%s5005_s23 + $0xc0] sm:$0xff] %vm512_vm2, %v3099_v2  ;;  %v2754_v57 = vadd.f32 %v2708_v58, %v2476_v35 }
 0x3e2   : > { %v3032_v17 = vadd.f32 %v2986_v29, %v2754_v57 }
 0x3e3   : > { %v2154_v18 = vpop.f32.mrf.mxu3 }
 0x3e4   : > { %v3068_v7 = vadd.f32 %v4992_v15, %v3032_v17  ;;  %v2198_v27 = vadd.f32 %v2154_v18, %v4927_v43  ;;  %v2989_v56 = vpop.f32.mrf.mxu2  ;;  %v2439_v43 = vpop.f32.mrf.mxu0 }
 0x3e5   : > { %v2720_v32 = vpop.f32.mrf.mxu1 }
 0x3e6   : > { %v3100_v28 = vmax.f32 %v3068_v7, 0.0  ;;  %v2477_v13 = vadd.f32 %v2433_v47, %v2198_v27 }
 0x3e8   : > { %3132 = vst.msk [vmem:[%s5005_s23 + $0xc8] sm:$0xff] %vm512_vm2, %v3100_v28  ;;  %v2755_v31 = vadd.f32 %v2711_v54, %v2477_v13 }
 0x3ea   : > { %v3033_v50 = vadd.f32 %v2989_v56, %v2755_v31 }
 0x3eb   : > { %v2157_v44 = vpop.f32.mrf.mxu3 }
 0x3ec   : > { %v3069_v33 = vadd.f32 %v4992_v15, %v3033_v50  ;;  %v2199_v22 = vadd.f32 %v2157_v44, %v4938_v39  ;;  %v2992_v59 = vpop.f32.mrf.mxu2  ;;  %v2442_v8 = vpop.f32.mrf.mxu0 }
 0x3ed   : > { %v2723_v58 = vpop.f32.mrf.mxu1 }
 0x3ee   : > { %v3101_v53 = vmax.f32 %v3069_v33, 0.0  ;;  %v2478_v63 = vadd.f32 %v2436_v36, %v2199_v22 }
 0x3f0   : > { %3133 = vst.msk [vmem:[%s5005_s23 + $0xd0] sm:$0xff] %vm512_vm2, %v3101_v53  ;;  %v2756_v51 = vadd.f32 %v2714_v40, %v2478_v63 }
 0x3f2   : > { %v3034_v62 = vadd.f32 %v2992_v59, %v2756_v51 }
 0x3f3   : > { %v2160_v20 = vpop.f32.mrf.mxu3 }
 0x3f4   : > { %v3070_v0 = vadd.f32 %v4992_v15, %v3034_v62  ;;  %v2200_v21 = vadd.f32 %v2160_v20, %v4948_v4  ;;  %v2995_v25 = vpop.f32.mrf.mxu2  ;;  %v2445_v11 = vpop.f32.mrf.mxu0 }
 0x3f5   : > { %v2726_v60 = vpop.f32.mrf.mxu1 }
 0x3f6   : > { %v3102_v12 = vmax.f32 %v3070_v0, 0.0  ;;  %v2479_v38 = vadd.f32 %v2439_v43, %v2200_v21 }
 0x3f8   : > { %3134 = vst.msk [vmem:[%s5005_s23 + $0xd8] sm:$0xff] %vm512_vm2, %v3102_v12  ;;  %v2757_v39 = vadd.f32 %v2717_v5, %v2479_v38 }
 0x3fa   : > { %v3035_v6 = vadd.f32 %v2995_v25, %v2757_v39 }
 0x3fb   : > { %v2163_v41 = vpop.f32.mrf.mxu3 }
 0x3fc   : > { %v3071_v61 = vadd.f32 %v4992_v15, %v3035_v6  ;;  %v2201_v26 = vadd.f32 %v2163_v41, %v4960_v14  ;;  %v2998_v10 = vpop.f32.mrf.mxu2  ;;  %v2448_v46 = vpop.f32.mrf.mxu0 }
 0x3fe   : > { %v3103_v24 = vmax.f32 %v3071_v61, 0.0  ;;  %v2480_v9 = vadd.f32 %v2442_v8, %v2201_v26 }
 0x400   : > { %3135 = vst.msk [vmem:[%s5005_s23 + $0xe0] sm:$0xff] %vm512_vm2, %v3103_v24  ;;  %v2758_v4 = vadd.f32 %v2720_v32, %v2480_v9 }
 0x402   : > { %v3036_v48 = vadd.f32 %v2998_v10, %v2758_v4 }
 0x403   : > { %v2166_v45 = vpop.f32.mrf.mxu3 }
 0x404   : > { %v3072_v30 = vadd.f32 %v4992_v15, %v3036_v48  ;;  %v2202_v16 = vadd.f32 %v2166_v45, %v4968_v37  ;;  %v3001_v19 = vpop.f32.mrf.mxu2 }
 0x406   : > { %v3104_v34 = vmax.f32 %v3072_v30, 0.0  ;;  %v2481_v3 = vadd.f32 %v2445_v11, %v2202_v16 }
 0x408   : > { %3136 = vst.msk [vmem:[%s5005_s23 + $0xe8] sm:$0xff] %vm512_vm2, %v3104_v34  ;;  %v2759_v14 = vadd.f32 %v2723_v58, %v2481_v3 }
 0x40a   : > { %v3037_v1 = vadd.f32 %v3001_v19, %v2759_v14 }
 0x40b   : > { %v2169_v49 = vpop.f32.mrf.mxu3 }
 0x40c   : > { %v3073_v52 = vadd.f32 %v4992_v15, %v3037_v1  ;;  %v2203_v23 = vadd.f32 %v2169_v49, %v4976_v42  ;;  %v3004_v47 = vpop.f32.mrf.mxu2 }
 0x40e   : > { %v3105_v55 = vmax.f32 %v3073_v52, 0.0  ;;  %v2482_v29 = vadd.f32 %v2448_v46, %v2203_v23 }
 0x410   : > { %3137 = vst.msk [vmem:[%s5005_s23 + $0xf0] sm:$0xff] %vm512_vm2, %v3105_v55  ;;  %v2760_v37 = vadd.f32 %v2726_v60, %v2482_v29 }
 0x412   : > { %v3038_v54 = vadd.f32 %v3004_v47, %v2760_v37 }
 0x414   : > { %v3074_v2 = vadd.f32 %v4992_v15, %v3038_v54 }
 0x416   : > { %v3106_v35 = vmax.f32 %v3074_v2, 0.0 }
 0x418   : > { %3138 = vst.msk [vmem:[%s5005_s23 + $0xf8] sm:$0xff] %vm512_vm2, %v3106_v35 }
 0x419 PF: > { %s15_s18 = sadd.s32 1, %s3585_s18  }
 0x41a   : > { %p12_p4 = scmp.ge.s32.totalorder %s15_s18, 4  }
 0x41c   :  { %14 = sbr.rel (!%p12_p4) target bundleno = 1 (0x1), region = 80 }

</bundles_post_ra>
